<compile_context>
chip_gen: v7x
topology: tpu7x:2x2x1
jax: 0.10.0
libtpu: 0.0.40
codegen_flags: <defaults>
</compile_context>

<pallas_src>
import functools

import jax
import jax.numpy as jnp
import numpy as np
from jax import lax
from jax.experimental import pallas as pl
from jax.experimental.pallas import tpu as pltpu

_GRAY = (0.299, 0.587, 0.114)
_SM_SCALE = 10.0 / 9.0       # folds "-10 * avg_pool3x3" into the grayscale weights


def _round_up(x, m):
    return (x + m - 1) // m * m


def _vmem_limit_bytes():
    """Generation-aware scoped-VMEM cap, leaving headroom for Mosaic internals."""
    cap = 64 * 2 ** 20                     # safe default (v7x physical per-core)
    try:
        cap = int(getattr(pltpu.get_tpu_info(), "vmem_capacity_bytes", cap))
    except Exception:
        pass
    return int(max(32 * 2 ** 20, min(cap - 12 * 2 ** 20, 100 * 2 ** 20)))


def _pick_block_rows(H, W, vmem_limit):
    """Largest row block (multiple of 8 dividing H) whose working set fits VMEM."""
    Wp = _round_up(W + 2, 128)
    # Rough per-row bytes: 14 double-buffered f32 input planes (width W) plus
    # ~12 canvas / temporary planes (width Wp).
    per_row = 4 * (2 * 14 * W + 12 * Wp)
    cap = max(8, (vmem_limit // 2) // per_row)
    if cap >= H or H % 8 != 0:
        return H
    cand = (min(cap, H) // 8) * 8
    while cand >= 8:
        if H % cand == 0:
            return cand
        cand -= 8
    return H


def _make_kernel(TH, THp, W, Wp, use_halo):
    D0 = 8                    # canvas row where this block's own TH rows start
    H0 = D0 - 3               # canvas rows [H0, D0): 3-row look-back halo
    B0 = D0 - 1               # first gradient-output row owned by this block
    w0, w1, w2 = (g * _SM_SCALE for g in _GRAY)

    def kernel(*refs):
        if use_halo:
            (rl_ref, rh_ref, ll_ref, lh_ref, il_ref, ih_ref,
             rlh_ref, rhh_ref, llh_ref, lhh_ref,
             out_ref, cL_ref, cG_ref) = refs
        else:
            (rl_ref, rh_ref, ll_ref, lh_ref, il_ref, ih_ref,
             out_ref, cL_ref, cG_ref) = refs

        f32 = jnp.float32
        k = pl.program_id(1)
        is_last = (k == pl.num_programs(1) - 1).astype(f32)

        # ---- five L1 partial sums: one fused pass, unrolled over channels --------
        L_low = ll_ref[0, 0]                       # (TH, W)
        L_high = lh_ref[0, 0]
        zero = jnp.float32(0.0)
        s_recon_low, s_recon_high = zero, zero
        s_crs_low, s_crs_high, s_equal = zero, zero, zero
        for c in range(3):
            rl, rh = rl_ref[0, c], rh_ref[0, c]
            il, ih = il_ref[0, c], ih_ref[0, c]
            s_recon_low += jnp.sum(jnp.abs(rl * L_low - il))
            s_recon_high += jnp.sum(jnp.abs(rh * L_high - ih))
            s_crs_low += jnp.sum(jnp.abs(rh * L_low - il))
            s_crs_high += jnp.sum(jnp.abs(rl * L_high - ih))
            s_equal += jnp.sum(jnp.abs(rl - rh))

        # ---- smoothness terms on a per-block zero-margin canvas ------------------
        if use_halo:
            live = (k > 0).astype(f32)             # block 0: zero padding above
            hL_low = llh_ref[0, 0, 5:8, :] * live
            hL_high = lhh_ref[0, 0, 5:8, :] * live
            hG_low = (w0 * rlh_ref[0, 0, 5:8, :] + w1 * rlh_ref[0, 1, 5:8, :]
                      + w2 * rlh_ref[0, 2, 5:8, :]) * live
            hG_high = (w0 * rhh_ref[0, 0, 5:8, :] + w1 * rhh_ref[0, 1, 5:8, :]
                       + w2 * rhh_ref[0, 2, 5:8, :]) * live
        else:
            hz = jnp.zeros((3, W), f32)
            hL_low = hL_high = hG_low = hG_high = hz

        G_low = w0 * rl_ref[0, 0] + w1 * rl_ref[0, 1] + w2 * rl_ref[0, 2]
        G_high = w0 * rh_ref[0, 0] + w1 * rh_ref[0, 1] + w2 * rh_ref[0, 2]

        zero_cols = jnp.zeros((TH + 3, Wp - W), jnp.float32)
        zero_tail = jnp.zeros((THp - D0 - TH, Wp), jnp.float32)

        def fill(canvas_ref, halo3, data):
            # Data rows at [D0, D0+TH), halo at [H0, D0); the right margin and the
            # >=2 tail rows are re-zeroed every step.  Canvas rows [0, H0) are never
            # read by any row that gets summed, so they may hold stale values.
            canvas_ref[H0:D0, 0:W] = halo3
            canvas_ref[D0:D0 + TH, 0:W] = data
            canvas_ref[H0:D0 + TH, W:Wp] = zero_cols
            canvas_ref[D0 + TH:THp, :] = zero_tail

        def prev(x, ax):
            return pltpu.roll(x, 1, ax)

        def nxt(x, ax):
            return pltpu.roll(x, x.shape[ax] - 1, ax)

        def box3_sum(g):                            # 9 * avg_pool2d(k=3, s=1, p=1)
            r = prev(g, 0) + g + nxt(g, 0)
            return prev(r, 1) + r + nxt(r, 1)

        def smooth_partial(L_data, hL, G_data, hG):
            fill(cL_ref, hL, L_data)
            fill(cG_ref, hG, G_data)
            Lc = cL_ref[...]
            Gc = cG_ref[...]
            t = (jnp.abs(Lc - prev(Lc, 1)) * jnp.exp(-box3_sum(jnp.abs(Gc - prev(Gc, 1))))
                 + jnp.abs(Lc - prev(Lc, 0)) * jnp.exp(-box3_sum(jnp.abs(Gc - prev(Gc, 0)))))
            band = jnp.sum(t[B0:B0 + TH, :])            # output rows k*TH-1 .. (k+1)*TH-2
            tail = jnp.sum(t[B0 + TH:B0 + TH + 2, :])   # output rows H-1, H (last block)
            return band + is_last * tail

        s_sm_low = smooth_partial(L_low, hL_low, G_low, hG_low)
        s_sm_high = smooth_partial(L_high, hL_high, G_high, hG_high)

        # ---- one lane-dense (8, 128) row of per-(n, k) partial sums --------------
        sums = (s_recon_low, s_recon_high, s_crs_low, s_crs_high, s_equal,
                s_sm_low, s_sm_high)
        rows = [jnp.full((1, 128), s, jnp.float32) for s in sums]
        rows.append(jnp.zeros((1, 128), jnp.float32))
        out_ref[0, 0] = jnp.concatenate(rows, axis=0)

    return kernel


def decom_loss(R_low, R_high, L_low, L_high, I_low, I_high, *, block_rows=None):
    """Forward pass of Decom_Loss; returns the same 4-tuple as the PyTorch module."""
    N, C, H, W = R_low.shape
    assert C == 3 and L_low.shape == (N, 1, H, W)
    f32 = jnp.float32
    args = [x.astype(f32) for x in (R_low, R_high, L_low, L_high, I_low, I_high)]

    vmem_limit = _vmem_limit_bytes()
    TH = _pick_block_rows(H, W, vmem_limit) if block_rows is None else int(block_rows)
    if TH != H:
        assert TH % 8 == 0 and H % TH == 0, "block_rows must be a multiple of 8 dividing H"
    B = H // TH
    use_halo = B > 1
    Wp = _round_up(W + 2, 128)
    THp = _round_up(TH + 10, 8)

    def mspec(c):
        return pl.BlockSpec((1, c, TH, W), lambda n, k: (n, 0, k, 0))

    in_specs = [mspec(3), mspec(3), mspec(1), mspec(1), mspec(3), mspec(3)]
    inputs = list(args)
    if use_halo:
        hb = TH // 8                               # halo block stride in 8-row units

        def hspec(c):
            return pl.BlockSpec(
                (1, c, 8, W),
                lambda n, k: (n, 0, jnp.maximum(k * hb - 1, 0), 0))

        in_specs += [hspec(3), hspec(3), hspec(1), hspec(1)]
        inputs += [args[0], args[1], args[2], args[3]]   # R_low, R_high, L_low, L_high

    plane = H * W
    cost = pl.CostEstimate(flops=int(N * plane * 120),
                           transcendentals=int(4 * N * plane),
                           bytes_accessed=int(4 * N * plane * 14 + 4 * N * B * 8 * 128))

    partials = pl.pallas_call(
        _make_kernel(TH, THp, W, Wp, use_halo),
        out_shape=jax.ShapeDtypeStruct((N, B, 8, 128), f32),
        grid_spec=pltpu.PrefetchScalarGridSpec(
            num_scalar_prefetch=0,
            grid=(N, B),
            in_specs=in_specs,
            out_specs=pl.BlockSpec((1, 1, 8, 128), lambda n, k: (n, k, 0, 0)),
            scratch_shapes=[pltpu.VMEM((THp, Wp), f32),
                            pltpu.VMEM((THp, Wp), f32)]),
        compiler_params=pltpu.CompilerParams(
            dimension_semantics=("parallel", "parallel"),
            vmem_limit_bytes=vmem_limit),
        cost_estimate=cost,
    )(*inputs)

    totals = jnp.sum(partials[..., 0], axis=(0, 1))      # (8,) raw sums
    inv_l1 = 1.0 / (N * 3 * H * W)
    inv_sm = 1.0 / (N * (H + 1) * (W + 1))
    recon_low = totals[0] * inv_l1
    recon_high = totals[1] * inv_l1
    crs_low = totals[2] * inv_l1
    crs_high = totals[3] * inv_l1
    equal_r = totals[4] * inv_l1
    sm_low = totals[5] * inv_sm
    sm_high = totals[6] * inv_sm
    loss_decom = (recon_high + 0.3 * recon_low + 0.001 * crs_low + 0.001 * crs_high
                  + 0.1 * (sm_low + sm_high) + 0.1 * equal_r)
    # Same 4-tuple as the PyTorch forward (R_high.detach() is forward-identical).
    return (loss_decom, recon_low + recon_high, equal_r, sm_low + sm_high)


# ---------------- plain-JAX reference (for in-script verification only) -------------
def _ref_gradient(x, direction):
    kx = jnp.array([[0.0, 0.0], [-1.0, 1.0]], jnp.float32).reshape(1, 1, 2, 2)
    k = kx if direction == 'x' else jnp.swapaxes(kx, 2, 3)
    out = lax.conv_general_dilated(
        x, k, window_strides=(1, 1), padding=((1, 1), (1, 1)),
        dimension_numbers=('NCHW', 'OIHW', 'NCHW'),
        precision=lax.Precision.HIGHEST)
    return jnp.abs(out)


def _ref_ave_gradient(x, direction):
    g = _ref_gradient(x, direction)
    s = lax.reduce_window(g, 0.0, lax.add, (1, 1, 3, 3), (1, 1, 1, 1),
                          ((0, 0), (0, 0), (1, 1), (1, 1)))
    return s / 9.0


def _ref_smooth(I, R):
    gray = (0.299 * R[:, 0] + 0.587 * R[:, 1] + 0.114 * R[:, 2])[:, None]
    return jnp.mean(
        _ref_gradient(I, 'x') * jnp.exp(-10.0 * _ref_ave_gradient(gray, 'x'))
        + _ref_gradient(I, 'y') * jnp.exp(-10.0 * _ref_ave_gradient(gray, 'y')))


def _ref_decom_loss(R_low, R_high, L_low, L_high, I_low, I_high):
    L_low3 = jnp.concatenate([L_low] * 3, axis=1)
    L_high3 = jnp.concatenate([L_high] * 3, axis=1)
    l1 = lambda a, b: jnp.mean(jnp.abs(a - b))
    recon_low = l1(R_low * L_low3, I_low)
    recon_high = l1(R_high * L_high3, I_high)
    crs_low = l1(R_high * L_low3, I_low)
    crs_high = l1(R_low * L_high3, I_high)
    equal_r = l1(R_low, R_high)
    sm_low = _ref_smooth(L_low, R_low)
    sm_high = _ref_smooth(L_high, R_high)
    loss = (recon_high + 0.3 * recon_low + 0.001 * crs_low + 0.001 * crs_high
            + 0.1 * (sm_low + sm_high) + 0.1 * equal_r)
    return (loss, recon_low + recon_high, equal_r, sm_low + sm_high)


def _run_case(N, H, W, key, block_rows=None):
    ks = jax.random.split(key, 6)
    shapes = [(N, 3, H, W), (N, 3, H, W), (N, 1, H, W), (N, 1, H, W),
              (N, 3, H, W), (N, 3, H, W)]
    args = [jax.random.uniform(k, s, jnp.float32) for k, s in zip(ks, shapes)]
    fn = functools.partial(decom_loss, block_rows=block_rows)
    out = jax.block_until_ready(jax.jit(fn)(*args))
    ref = _ref_decom_loss(*args)
    for got, want in zip(out, ref):
        np.testing.assert_allclose(np.asarray(got), np.asarray(want),
                                   rtol=3e-4, atol=2e-5)


if __name__ == "__main__":
    root = jax.random.PRNGKey(0)
    k1, k2 = jax.random.split(root)
    # Single row-block path (B == 1, no halo inputs).
    _run_case(2, 16, 16, k1)
    # Multi-block halo path + exact 2-column lane margin (W + 2 == 128).
    _run_case(1, 32, 126, k2, block_rows=8)
    print("KERNEL_OK")
</pallas_src>

<mosaic_0001>
module attributes {stable_mosaic.version = 11 : i64} {
  func.func @kernel(%arg0: i32, %arg1: i32, %arg2: memref<1x3x16x16xf32, #tpu.memory_space<vmem>>, %arg3: memref<1x3x16x16xf32, #tpu.memory_space<vmem>>, %arg4: memref<1x1x16x16xf32, #tpu.memory_space<vmem>>, %arg5: memref<1x1x16x16xf32, #tpu.memory_space<vmem>>, %arg6: memref<1x3x16x16xf32, #tpu.memory_space<vmem>>, %arg7: memref<1x3x16x16xf32, #tpu.memory_space<vmem>>, %arg8: memref<1x1x8x128xf32, #tpu.memory_space<vmem>>, %arg9: memref<32x128xf32, #tpu.memory_space<vmem>>, %arg10: memref<32x128xf32, #tpu.memory_space<vmem>>) attributes {dimension_semantics = [#tpu.dimension_semantics<parallel>, #tpu.dimension_semantics<parallel>], iteration_bounds = array<i64: 2, 1>, scalar_prefetch = 0 : i64, scratch_operands = 2 : i64, tpu.core_type = #tpu.core_type<tc>, window_params = [{transform_indices = @transform_0, window_bounds = array<i64: 1, 3, 16, 16>}, {transform_indices = @transform_1, window_bounds = array<i64: 1, 3, 16, 16>}, {transform_indices = @transform_2, window_bounds = array<i64: 1, 1, 16, 16>}, {transform_indices = @transform_3, window_bounds = array<i64: 1, 1, 16, 16>}, {transform_indices = @transform_4, window_bounds = array<i64: 1, 3, 16, 16>}, {transform_indices = @transform_5, window_bounds = array<i64: 1, 3, 16, 16>}, {transform_indices = @transform_6, window_bounds = array<i64: 1, 1, 8, 128>}]} {
    %c0_i32 = arith.constant 0 : i32
    %0 = arith.cmpi eq, %arg1, %c0_i32 : i32
    %1 = arith.extui %0 : i1 to i32
    %2 = arith.sitofp %1 : i32 to f32
    %c0 = arith.constant 0 : index
    %c0_0 = arith.constant 0 : index
    %c0_1 = arith.constant 0 : index
    %c0_2 = arith.constant 0 : index
    %3 = vector.load %arg4[%c0, %c0_0, %c0_1, %c0_2] : memref<1x1x16x16xf32, #tpu.memory_space<vmem>>, vector<1x1x16x16xf32>
    %4 = vector.shape_cast %3 : vector<1x1x16x16xf32> to vector<16x16xf32>
    %c0_3 = arith.constant 0 : index
    %c0_4 = arith.constant 0 : index
    %c0_5 = arith.constant 0 : index
    %c0_6 = arith.constant 0 : index
    %5 = vector.load %arg5[%c0_3, %c0_4, %c0_5, %c0_6] : memref<1x1x16x16xf32, #tpu.memory_space<vmem>>, vector<1x1x16x16xf32>
    %6 = vector.shape_cast %5 : vector<1x1x16x16xf32> to vector<16x16xf32>
    %c0_7 = arith.constant 0 : index
    %c0_8 = arith.constant 0 : index
    %c0_9 = arith.constant 0 : index
    %c0_10 = arith.constant 0 : index
    %7 = vector.load %arg2[%c0_7, %c0_8, %c0_9, %c0_10] : memref<1x3x16x16xf32, #tpu.memory_space<vmem>>, vector<1x1x16x16xf32>
    %8 = vector.shape_cast %7 : vector<1x1x16x16xf32> to vector<16x16xf32>
    %c0_11 = arith.constant 0 : index
    %c0_12 = arith.constant 0 : index
    %c0_13 = arith.constant 0 : index
    %c0_14 = arith.constant 0 : index
    %9 = vector.load %arg3[%c0_11, %c0_12, %c0_13, %c0_14] : memref<1x3x16x16xf32, #tpu.memory_space<vmem>>, vector<1x1x16x16xf32>
    %10 = vector.shape_cast %9 : vector<1x1x16x16xf32> to vector<16x16xf32>
    %c0_15 = arith.constant 0 : index
    %c0_16 = arith.constant 0 : index
    %c0_17 = arith.constant 0 : index
    %c0_18 = arith.constant 0 : index
    %11 = vector.load %arg6[%c0_15, %c0_16, %c0_17, %c0_18] : memref<1x3x16x16xf32, #tpu.memory_space<vmem>>, vector<1x1x16x16xf32>
    %12 = vector.shape_cast %11 : vector<1x1x16x16xf32> to vector<16x16xf32>
    %c0_19 = arith.constant 0 : index
    %c0_20 = arith.constant 0 : index
    %c0_21 = arith.constant 0 : index
    %c0_22 = arith.constant 0 : index
    %13 = vector.load %arg7[%c0_19, %c0_20, %c0_21, %c0_22] : memref<1x3x16x16xf32, #tpu.memory_space<vmem>>, vector<1x1x16x16xf32>
    %14 = vector.shape_cast %13 : vector<1x1x16x16xf32> to vector<16x16xf32>
    %15 = arith.mulf %8, %4 : vector<16x16xf32>
    %16 = arith.subf %15, %12 : vector<16x16xf32>
    %17 = math.absf %16 : vector<16x16xf32>
    %18 = vector.shape_cast %17 : vector<16x16xf32> to vector<1x16x16xf32>
    %cst = arith.constant dense<0.000000e+00> : vector<1xf32>
    %19 = vector.multi_reduction <add>, %18, %cst [1, 2] : vector<1x16x16xf32> to vector<1xf32>
    %20 = vector.shape_cast %19 : vector<1xf32> to vector<1x1x1xf32>
    %21 = vector.extract %20[0, 0, 0] : f32 from vector<1x1x1xf32>
    %cst_23 = arith.constant 0.000000e+00 : f32
    %22 = arith.addf %cst_23, %21 : f32
    %23 = arith.mulf %10, %6 : vector<16x16xf32>
    %24 = arith.subf %23, %14 : vector<16x16xf32>
    %25 = math.absf %24 : vector<16x16xf32>
    %26 = vector.shape_cast %25 : vector<16x16xf32> to vector<1x16x16xf32>
    %cst_24 = arith.constant dense<0.000000e+00> : vector<1xf32>
    %27 = vector.multi_reduction <add>, %26, %cst_24 [1, 2] : vector<1x16x16xf32> to vector<1xf32>
    %28 = vector.shape_cast %27 : vector<1xf32> to vector<1x1x1xf32>
    %29 = vector.extract %28[0, 0, 0] : f32 from vector<1x1x1xf32>
    %cst_25 = arith.constant 0.000000e+00 : f32
    %30 = arith.addf %cst_25, %29 : f32
    %31 = arith.mulf %10, %4 : vector<16x16xf32>
    %32 = arith.subf %31, %12 : vector<16x16xf32>
    %33 = math.absf %32 : vector<16x16xf32>
    %34 = vector.shape_cast %33 : vector<16x16xf32> to vector<1x16x16xf32>
    %cst_26 = arith.constant dense<0.000000e+00> : vector<1xf32>
    %35 = vector.multi_reduction <add>, %34, %cst_26 [1, 2] : vector<1x16x16xf32> to vector<1xf32>
    %36 = vector.shape_cast %35 : vector<1xf32> to vector<1x1x1xf32>
    %37 = vector.extract %36[0, 0, 0] : f32 from vector<1x1x1xf32>
    %cst_27 = arith.constant 0.000000e+00 : f32
    %38 = arith.addf %cst_27, %37 : f32
    %39 = arith.mulf %8, %6 : vector<16x16xf32>
    %40 = arith.subf %39, %14 : vector<16x16xf32>
    %41 = math.absf %40 : vector<16x16xf32>
    %42 = vector.shape_cast %41 : vector<16x16xf32> to vector<1x16x16xf32>
    %cst_28 = arith.constant dense<0.000000e+00> : vector<1xf32>
    %43 = vector.multi_reduction <add>, %42, %cst_28 [1, 2] : vector<1x16x16xf32> to vector<1xf32>
    %44 = vector.shape_cast %43 : vector<1xf32> to vector<1x1x1xf32>
    %45 = vector.extract %44[0, 0, 0] : f32 from vector<1x1x1xf32>
    %cst_29 = arith.constant 0.000000e+00 : f32
    %46 = arith.addf %cst_29, %45 : f32
    %47 = arith.subf %8, %10 : vector<16x16xf32>
    %48 = math.absf %47 : vector<16x16xf32>
    %49 = vector.shape_cast %48 : vector<16x16xf32> to vector<1x16x16xf32>
    %cst_30 = arith.constant dense<0.000000e+00> : vector<1xf32>
    %50 = vector.multi_reduction <add>, %49, %cst_30 [1, 2] : vector<1x16x16xf32> to vector<1xf32>
    %51 = vector.shape_cast %50 : vector<1xf32> to vector<1x1x1xf32>
    %52 = vector.extract %51[0, 0, 0] : f32 from vector<1x1x1xf32>
    %cst_31 = arith.constant 0.000000e+00 : f32
    %53 = arith.addf %cst_31, %52 : f32
    %c0_32 = arith.constant 0 : index
    %c1 = arith.constant 1 : index
    %c0_33 = arith.constant 0 : index
    %c0_34 = arith.constant 0 : index
    %54 = vector.load %arg2[%c0_32, %c1, %c0_33, %c0_34] : memref<1x3x16x16xf32, #tpu.memory_space<vmem>>, vector<1x1x16x16xf32>
    %55 = vector.shape_cast %54 : vector<1x1x16x16xf32> to vector<16x16xf32>
    %c0_35 = arith.constant 0 : index
    %c1_36 = arith.constant 1 : index
    %c0_37 = arith.constant 0 : index
    %c0_38 = arith.constant 0 : index
    %56 = vector.load %arg3[%c0_35, %c1_36, %c0_37, %c0_38] : memref<1x3x16x16xf32, #tpu.memory_space<vmem>>, vector<1x1x16x16xf32>
    %57 = vector.shape_cast %56 : vector<1x1x16x16xf32> to vector<16x16xf32>
    %c0_39 = arith.constant 0 : index
    %c1_40 = arith.constant 1 : index
    %c0_41 = arith.constant 0 : index
    %c0_42 = arith.constant 0 : index
    %58 = vector.load %arg6[%c0_39, %c1_40, %c0_41, %c0_42] : memref<1x3x16x16xf32, #tpu.memory_space<vmem>>, vector<1x1x16x16xf32>
    %59 = vector.shape_cast %58 : vector<1x1x16x16xf32> to vector<16x16xf32>
    %c0_43 = arith.constant 0 : index
    %c1_44 = arith.constant 1 : index
    %c0_45 = arith.constant 0 : index
    %c0_46 = arith.constant 0 : index
    %60 = vector.load %arg7[%c0_43, %c1_44, %c0_45, %c0_46] : memref<1x3x16x16xf32, #tpu.memory_space<vmem>>, vector<1x1x16x16xf32>
    %61 = vector.shape_cast %60 : vector<1x1x16x16xf32> to vector<16x16xf32>
    %62 = arith.mulf %55, %4 : vector<16x16xf32>
    %63 = arith.subf %62, %59 : vector<16x16xf32>
    %64 = math.absf %63 : vector<16x16xf32>
    %65 = vector.shape_cast %64 : vector<16x16xf32> to vector<1x16x16xf32>
    %cst_47 = arith.constant dense<0.000000e+00> : vector<1xf32>
    %66 = vector.multi_reduction <add>, %65, %cst_47 [1, 2] : vector<1x16x16xf32> to vector<1xf32>
    %67 = vector.shape_cast %66 : vector<1xf32> to vector<1x1x1xf32>
    %68 = vector.extract %67[0, 0, 0] : f32 from vector<1x1x1xf32>
    %69 = arith.addf %22, %68 : f32
    %70 = arith.mulf %57, %6 : vector<16x16xf32>
    %71 = arith.subf %70, %61 : vector<16x16xf32>
    %72 = math.absf %71 : vector<16x16xf32>
    %73 = vector.shape_cast %72 : vector<16x16xf32> to vector<1x16x16xf32>
    %cst_48 = arith.constant dense<0.000000e+00> : vector<1xf32>
    %74 = vector.multi_reduction <add>, %73, %cst_48 [1, 2] : vector<1x16x16xf32> to vector<1xf32>
    %75 = vector.shape_cast %74 : vector<1xf32> to vector<1x1x1xf32>
    %76 = vector.extract %75[0, 0, 0] : f32 from vector<1x1x1xf32>
    %77 = arith.addf %30, %76 : f32
    %78 = arith.mulf %57, %4 : vector<16x16xf32>
    %79 = arith.subf %78, %59 : vector<16x16xf32>
    %80 = math.absf %79 : vector<16x16xf32>
    %81 = vector.shape_cast %80 : vector<16x16xf32> to vector<1x16x16xf32>
    %cst_49 = arith.constant dense<0.000000e+00> : vector<1xf32>
    %82 = vector.multi_reduction <add>, %81, %cst_49 [1, 2] : vector<1x16x16xf32> to vector<1xf32>
    %83 = vector.shape_cast %82 : vector<1xf32> to vector<1x1x1xf32>
    %84 = vector.extract %83[0, 0, 0] : f32 from vector<1x1x1xf32>
    %85 = arith.addf %38, %84 : f32
    %86 = arith.mulf %55, %6 : vector<16x16xf32>
    %87 = arith.subf %86, %61 : vector<16x16xf32>
    %88 = math.absf %87 : vector<16x16xf32>
    %89 = vector.shape_cast %88 : vector<16x16xf32> to vector<1x16x16xf32>
    %cst_50 = arith.constant dense<0.000000e+00> : vector<1xf32>
    %90 = vector.multi_reduction <add>, %89, %cst_50 [1, 2] : vector<1x16x16xf32> to vector<1xf32>
    %91 = vector.shape_cast %90 : vector<1xf32> to vector<1x1x1xf32>
    %92 = vector.extract %91[0, 0, 0] : f32 from vector<1x1x1xf32>
    %93 = arith.addf %46, %92 : f32
    %94 = arith.subf %55, %57 : vector<16x16xf32>
    %95 = math.absf %94 : vector<16x16xf32>
    %96 = vector.shape_cast %95 : vector<16x16xf32> to vector<1x16x16xf32>
    %cst_51 = arith.constant dense<0.000000e+00> : vector<1xf32>
    %97 = vector.multi_reduction <add>, %96, %cst_51 [1, 2] : vector<1x16x16xf32> to vector<1xf32>
    %98 = vector.shape_cast %97 : vector<1xf32> to vector<1x1x1xf32>
    %99 = vector.extract %98[0, 0, 0] : f32 from vector<1x1x1xf32>
    %100 = arith.addf %53, %99 : f32
    %c0_52 = arith.constant 0 : index
    %c2 = arith.constant 2 : index
    %c0_53 = arith.constant 0 : index
    %c0_54 = arith.constant 0 : index
    %101 = vector.load %arg2[%c0_52, %c2, %c0_53, %c0_54] : memref<1x3x16x16xf32, #tpu.memory_space<vmem>>, vector<1x1x16x16xf32>
    %102 = vector.shape_cast %101 : vector<1x1x16x16xf32> to vector<16x16xf32>
    %c0_55 = arith.constant 0 : index
    %c2_56 = arith.constant 2 : index
    %c0_57 = arith.constant 0 : index
    %c0_58 = arith.constant 0 : index
    %103 = vector.load %arg3[%c0_55, %c2_56, %c0_57, %c0_58] : memref<1x3x16x16xf32, #tpu.memory_space<vmem>>, vector<1x1x16x16xf32>
    %104 = vector.shape_cast %103 : vector<1x1x16x16xf32> to vector<16x16xf32>
    %c0_59 = arith.constant 0 : index
    %c2_60 = arith.constant 2 : index
    %c0_61 = arith.constant 0 : index
    %c0_62 = arith.constant 0 : index
    %105 = vector.load %arg6[%c0_59, %c2_60, %c0_61, %c0_62] : memref<1x3x16x16xf32, #tpu.memory_space<vmem>>, vector<1x1x16x16xf32>
    %106 = vector.shape_cast %105 : vector<1x1x16x16xf32> to vector<16x16xf32>
    %c0_63 = arith.constant 0 : index
    %c2_64 = arith.constant 2 : index
    %c0_65 = arith.constant 0 : index
    %c0_66 = arith.constant 0 : index
    %107 = vector.load %arg7[%c0_63, %c2_64, %c0_65, %c0_66] : memref<1x3x16x16xf32, #tpu.memory_space<vmem>>, vector<1x1x16x16xf32>
    %108 = vector.shape_cast %107 : vector<1x1x16x16xf32> to vector<16x16xf32>
    %109 = arith.mulf %102, %4 : vector<16x16xf32>
    %110 = arith.subf %109, %106 : vector<16x16xf32>
    %111 = math.absf %110 : vector<16x16xf32>
    %112 = vector.shape_cast %111 : vector<16x16xf32> to vector<1x16x16xf32>
    %cst_67 = arith.constant dense<0.000000e+00> : vector<1xf32>
    %113 = vector.multi_reduction <add>, %112, %cst_67 [1, 2] : vector<1x16x16xf32> to vector<1xf32>
    %114 = vector.shape_cast %113 : vector<1xf32> to vector<1x1x1xf32>
    %115 = vector.extract %114[0, 0, 0] : f32 from vector<1x1x1xf32>
    %116 = arith.addf %69, %115 : f32
    %117 = arith.mulf %104, %6 : vector<16x16xf32>
    %118 = arith.subf %117, %108 : vector<16x16xf32>
    %119 = math.absf %118 : vector<16x16xf32>
    %120 = vector.shape_cast %119 : vector<16x16xf32> to vector<1x16x16xf32>
    %cst_68 = arith.constant dense<0.000000e+00> : vector<1xf32>
    %121 = vector.multi_reduction <add>, %120, %cst_68 [1, 2] : vector<1x16x16xf32> to vector<1xf32>
    %122 = vector.shape_cast %121 : vector<1xf32> to vector<1x1x1xf32>
    %123 = vector.extract %122[0, 0, 0] : f32 from vector<1x1x1xf32>
    %124 = arith.addf %77, %123 : f32
    %125 = arith.mulf %104, %4 : vector<16x16xf32>
    %126 = arith.subf %125, %106 : vector<16x16xf32>
    %127 = math.absf %126 : vector<16x16xf32>
    %128 = vector.shape_cast %127 : vector<16x16xf32> to vector<1x16x16xf32>
    %cst_69 = arith.constant dense<0.000000e+00> : vector<1xf32>
    %129 = vector.multi_reduction <add>, %128, %cst_69 [1, 2] : vector<1x16x16xf32> to vector<1xf32>
    %130 = vector.shape_cast %129 : vector<1xf32> to vector<1x1x1xf32>
    %131 = vector.extract %130[0, 0, 0] : f32 from vector<1x1x1xf32>
    %132 = arith.addf %85, %131 : f32
    %133 = arith.mulf %102, %6 : vector<16x16xf32>
    %134 = arith.subf %133, %108 : vector<16x16xf32>
    %135 = math.absf %134 : vector<16x16xf32>
    %136 = vector.shape_cast %135 : vector<16x16xf32> to vector<1x16x16xf32>
    %cst_70 = arith.constant dense<0.000000e+00> : vector<1xf32>
    %137 = vector.multi_reduction <add>, %136, %cst_70 [1, 2] : vector<1x16x16xf32> to vector<1xf32>
    %138 = vector.shape_cast %137 : vector<1xf32> to vector<1x1x1xf32>
    %139 = vector.extract %138[0, 0, 0] : f32 from vector<1x1x1xf32>
    %140 = arith.addf %93, %139 : f32
    %141 = arith.subf %102, %104 : vector<16x16xf32>
    %142 = math.absf %141 : vector<16x16xf32>
    %143 = vector.shape_cast %142 : vector<16x16xf32> to vector<1x16x16xf32>
    %cst_71 = arith.constant dense<0.000000e+00> : vector<1xf32>
    %144 = vector.multi_reduction <add>, %143, %cst_71 [1, 2] : vector<1x16x16xf32> to vector<1xf32>
    %145 = vector.shape_cast %144 : vector<1xf32> to vector<1x1x1xf32>
    %146 = vector.extract %145[0, 0, 0] : f32 from vector<1x1x1xf32>
    %147 = arith.addf %100, %146 : f32
    %cst_72 = arith.constant 0.000000e+00 : f32
    %148 = vector.broadcast %cst_72 : f32 to vector<3x16xf32>
    %c0_73 = arith.constant 0 : index
    %c0_74 = arith.constant 0 : index
    %c0_75 = arith.constant 0 : index
    %c0_76 = arith.constant 0 : index
    %149 = vector.load %arg2[%c0_73, %c0_74, %c0_75, %c0_76] : memref<1x3x16x16xf32, #tpu.memory_space<vmem>>, vector<1x1x16x16xf32>
    %150 = vector.shape_cast %149 : vector<1x1x16x16xf32> to vector<16x16xf32>
    %cst_77 = arith.constant 0.332222223 : f32
    %151 = vector.broadcast %cst_77 : f32 to vector<16x16xf32>
    %152 = arith.mulf %151, %150 : vector<16x16xf32>
    %c0_78 = arith.constant 0 : index
    %c1_79 = arith.constant 1 : index
    %c0_80 = arith.constant 0 : index
    %c0_81 = arith.constant 0 : index
    %153 = vector.load %arg2[%c0_78, %c1_79, %c0_80, %c0_81] : memref<1x3x16x16xf32, #tpu.memory_space<vmem>>, vector<1x1x16x16xf32>
    %154 = vector.shape_cast %153 : vector<1x1x16x16xf32> to vector<16x16xf32>
    %cst_82 = arith.constant 0.652222216 : f32
    %155 = vector.broadcast %cst_82 : f32 to vector<16x16xf32>
    %156 = arith.mulf %155, %154 : vector<16x16xf32>
    %157 = arith.addf %152, %156 : vector<16x16xf32>
    %c0_83 = arith.constant 0 : index
    %c2_84 = arith.constant 2 : index
    %c0_85 = arith.constant 0 : index
    %c0_86 = arith.constant 0 : index
    %158 = vector.load %arg2[%c0_83, %c2_84, %c0_85, %c0_86] : memref<1x3x16x16xf32, #tpu.memory_space<vmem>>, vector<1x1x16x16xf32>
    %159 = vector.shape_cast %158 : vector<1x1x16x16xf32> to vector<16x16xf32>
    %cst_87 = arith.constant 0.126666665 : f32
    %160 = vector.broadcast %cst_87 : f32 to vector<16x16xf32>
    %161 = arith.mulf %160, %159 : vector<16x16xf32>
    %162 = arith.addf %157, %161 : vector<16x16xf32>
    %c0_88 = arith.constant 0 : index
    %c0_89 = arith.constant 0 : index
    %c0_90 = arith.constant 0 : index
    %c0_91 = arith.constant 0 : index
    %163 = vector.load %arg3[%c0_88, %c0_89, %c0_90, %c0_91] : memref<1x3x16x16xf32, #tpu.memory_space<vmem>>, vector<1x1x16x16xf32>
    %164 = vector.shape_cast %163 : vector<1x1x16x16xf32> to vector<16x16xf32>
    %cst_92 = arith.constant 0.332222223 : f32
    %165 = vector.broadcast %cst_92 : f32 to vector<16x16xf32>
    %166 = arith.mulf %165, %164 : vector<16x16xf32>
    %c0_93 = arith.constant 0 : index
    %c1_94 = arith.constant 1 : index
    %c0_95 = arith.constant 0 : index
    %c0_96 = arith.constant 0 : index
    %167 = vector.load %arg3[%c0_93, %c1_94, %c0_95, %c0_96] : memref<1x3x16x16xf32, #tpu.memory_space<vmem>>, vector<1x1x16x16xf32>
    %168 = vector.shape_cast %167 : vector<1x1x16x16xf32> to vector<16x16xf32>
    %cst_97 = arith.constant 0.652222216 : f32
    %169 = vector.broadcast %cst_97 : f32 to vector<16x16xf32>
    %170 = arith.mulf %169, %168 : vector<16x16xf32>
    %171 = arith.addf %166, %170 : vector<16x16xf32>
    %c0_98 = arith.constant 0 : index
    %c2_99 = arith.constant 2 : index
    %c0_100 = arith.constant 0 : index
    %c0_101 = arith.constant 0 : index
    %172 = vector.load %arg3[%c0_98, %c2_99, %c0_100, %c0_101] : memref<1x3x16x16xf32, #tpu.memory_space<vmem>>, vector<1x1x16x16xf32>
    %173 = vector.shape_cast %172 : vector<1x1x16x16xf32> to vector<16x16xf32>
    %cst_102 = arith.constant 0.126666665 : f32
    %174 = vector.broadcast %cst_102 : f32 to vector<16x16xf32>
    %175 = arith.mulf %174, %173 : vector<16x16xf32>
    %176 = arith.addf %171, %175 : vector<16x16xf32>
    %cst_103 = arith.constant 0.000000e+00 : f32
    %177 = vector.broadcast %cst_103 : f32 to vector<19x112xf32>
    %cst_104 = arith.constant 0.000000e+00 : f32
    %178 = vector.broadcast %cst_104 : f32 to vector<8x128xf32>
    %c5 = arith.constant 5 : index
    %c0_105 = arith.constant 0 : index
    %179 = vector.load %arg9[%c5, %c0_105] : memref<32x128xf32, #tpu.memory_space<vmem>>, vector<3x16xf32>
    tpu.vector_store %arg9[%c5, %c0_105], %148 {strides = array<i32>} : memref<32x128xf32, #tpu.memory_space<vmem>>, vector<3x16xf32>,
    %c8 = arith.constant 8 : index
    %c0_106 = arith.constant 0 : index
    %180 = vector.load %arg9[%c8, %c0_106] : memref<32x128xf32, #tpu.memory_space<vmem>>, vector<16x16xf32>
    tpu.vector_store %arg9[%c8, %c0_106], %4 {strides = array<i32>} : memref<32x128xf32, #tpu.memory_space<vmem>>, vector<16x16xf32>,
    %c5_107 = arith.constant 5 : index
    %c16 = arith.constant 16 : index
    %181 = vector.load %arg9[%c5_107, %c16] : memref<32x128xf32, #tpu.memory_space<vmem>>, vector<19x112xf32>
    tpu.vector_store %arg9[%c5_107, %c16], %177 {strides = array<i32>} : memref<32x128xf32, #tpu.memory_space<vmem>>, vector<19x112xf32>,
    %c24 = arith.constant 24 : index
    %c0_108 = arith.constant 0 : index
    %182 = vector.load %arg9[%c24, %c0_108] : memref<32x128xf32, #tpu.memory_space<vmem>>, vector<8x128xf32>
    tpu.vector_store %arg9[%c24, %c0_108], %178 {strides = array<i32>} : memref<32x128xf32, #tpu.memory_space<vmem>>, vector<8x128xf32>,
    %c5_109 = arith.constant 5 : index
    %c0_110 = arith.constant 0 : index
    %183 = vector.load %arg10[%c5_109, %c0_110] : memref<32x128xf32, #tpu.memory_space<vmem>>, vector<3x16xf32>
    tpu.vector_store %arg10[%c5_109, %c0_110], %148 {strides = array<i32>} : memref<32x128xf32, #tpu.memory_space<vmem>>, vector<3x16xf32>,
    %c8_111 = arith.constant 8 : index
    %c0_112 = arith.constant 0 : index
    %184 = vector.load %arg10[%c8_111, %c0_112] : memref<32x128xf32, #tpu.memory_space<vmem>>, vector<16x16xf32>
    tpu.vector_store %arg10[%c8_111, %c0_112], %162 {strides = array<i32>} : memref<32x128xf32, #tpu.memory_space<vmem>>, vector<16x16xf32>,
    %c5_113 = arith.constant 5 : index
    %c16_114 = arith.constant 16 : index
    %185 = vector.load %arg10[%c5_113, %c16_114] : memref<32x128xf32, #tpu.memory_space<vmem>>, vector<19x112xf32>
    tpu.vector_store %arg10[%c5_113, %c16_114], %177 {strides = array<i32>} : memref<32x128xf32, #tpu.memory_space<vmem>>, vector<19x112xf32>,
    %c24_115 = arith.constant 24 : index
    %c0_116 = arith.constant 0 : index
    %186 = vector.load %arg10[%c24_115, %c0_116] : memref<32x128xf32, #tpu.memory_space<vmem>>, vector<8x128xf32>
    tpu.vector_store %arg10[%c24_115, %c0_116], %178 {strides = array<i32>} : memref<32x128xf32, #tpu.memory_space<vmem>>, vector<8x128xf32>,
    %c0_117 = arith.constant 0 : index
    %c0_118 = arith.constant 0 : index
    %187 = vector.load %arg9[%c0_117, %c0_118] : memref<32x128xf32, #tpu.memory_space<vmem>>, vector<32x128xf32>
    %c0_119 = arith.constant 0 : index
    %c0_120 = arith.constant 0 : index
    %188 = vector.load %arg10[%c0_119, %c0_120] : memref<32x128xf32, #tpu.memory_space<vmem>>, vector<32x128xf32>
    %c1_i32 = arith.constant 1 : i32
    %189 = tpu.dynamic_rotate %187 by %c1_i32 dim 1 : vector<32x128xf32>, i32 -> vector<32x128xf32>
    %190 = arith.subf %187, %189 : vector<32x128xf32>
    %191 = math.absf %190 : vector<32x128xf32>
    %c1_i32_121 = arith.constant 1 : i32
    %192 = tpu.dynamic_rotate %188 by %c1_i32_121 dim 1 : vector<32x128xf32>, i32 -> vector<32x128xf32>
    %193 = arith.subf %188, %192 : vector<32x128xf32>
    %194 = math.absf %193 : vector<32x128xf32>
    %c1_i32_122 = arith.constant 1 : i32
    %195 = tpu.dynamic_rotate %194 by %c1_i32_122 dim 0 : vector<32x128xf32>, i32 -> vector<32x128xf32>
    %196 = arith.addf %195, %194 : vector<32x128xf32>
    %c31_i32 = arith.constant 31 : i32
    %197 = tpu.dynamic_rotate %194 by %c31_i32 dim 0 : vector<32x128xf32>, i32 -> vector<32x128xf32>
    %198 = arith.addf %196, %197 : vector<32x128xf32>
    %c1_i32_123 = arith.constant 1 : i32
    %199 = tpu.dynamic_rotate %198 by %c1_i32_123 dim 1 : vector<32x128xf32>, i32 -> vector<32x128xf32>
    %200 = arith.addf %199, %198 : vector<32x128xf32>
    %c127_i32 = arith.constant 127 : i32
    %201 = tpu.dynamic_rotate %198 by %c127_i32 dim 1 : vector<32x128xf32>, i32 -> vector<32x128xf32>
    %202 = arith.addf %200, %201 : vector<32x128xf32>
    %cst_124 = arith.constant 0.000000e+00 : f32
    %203 = vector.broadcast %cst_124 : f32 to vector<32x128xf32>
    %204 = arith.subf %203, %202 : vector<32x128xf32>
    %205 = math.exp %204 : vector<32x128xf32>
    %206 = arith.mulf %191, %205 : vector<32x128xf32>
    %c1_i32_125 = arith.constant 1 : i32
    %207 = tpu.dynamic_rotate %187 by %c1_i32_125 dim 0 : vector<32x128xf32>, i32 -> vector<32x128xf32>
    %208 = arith.subf %187, %207 : vector<32x128xf32>
    %209 = math.absf %208 : vector<32x128xf32>
    %c1_i32_126 = arith.constant 1 : i32
    %210 = tpu.dynamic_rotate %188 by %c1_i32_126 dim 0 : vector<32x128xf32>, i32 -> vector<32x128xf32>
    %211 = arith.subf %188, %210 : vector<32x128xf32>
    %212 = math.absf %211 : vector<32x128xf32>
    %c1_i32_127 = arith.constant 1 : i32
    %213 = tpu.dynamic_rotate %212 by %c1_i32_127 dim 0 : vector<32x128xf32>, i32 -> vector<32x128xf32>
    %214 = arith.addf %213, %212 : vector<32x128xf32>
    %c31_i32_128 = arith.constant 31 : i32
    %215 = tpu.dynamic_rotate %212 by %c31_i32_128 dim 0 : vector<32x128xf32>, i32 -> vector<32x128xf32>
    %216 = arith.addf %214, %215 : vector<32x128xf32>
    %c1_i32_129 = arith.constant 1 : i32
    %217 = tpu.dynamic_rotate %216 by %c1_i32_129 dim 1 : vector<32x128xf32>, i32 -> vector<32x128xf32>
    %218 = arith.addf %217, %216 : vector<32x128xf32>
    %c127_i32_130 = arith.constant 127 : i32
    %219 = tpu.dynamic_rotate %216 by %c127_i32_130 dim 1 : vector<32x128xf32>, i32 -> vector<32x128xf32>
    %220 = arith.addf %218, %219 : vector<32x128xf32>
    %cst_131 = arith.constant 0.000000e+00 : f32
    %221 = vector.broadcast %cst_131 : f32 to vector<32x128xf32>
    %222 = arith.subf %221, %220 : vector<32x128xf32>
    %223 = math.exp %222 : vector<32x128xf32>
    %224 = arith.mulf %209, %223 : vector<32x128xf32>
    %225 = arith.addf %206, %224 : vector<32x128xf32>
    %226 = vector.extract_strided_slice %225 {offsets = [7, 0], sizes = [16, 128], strides = [1, 1]} : vector<32x128xf32> to vector<16x128xf32>
    %227 = vector.shape_cast %226 : vector<16x128xf32> to vector<1x16x128xf32>
    %cst_132 = arith.constant dense<0.000000e+00> : vector<1xf32>
    %228 = vector.multi_reduction <add>, %227, %cst_132 [1, 2] : vector<1x16x128xf32> to vector<1xf32>
    %229 = vector.shape_cast %228 : vector<1xf32> to vector<1x1x1xf32>
    %230 = vector.extract %229[0, 0, 0] : f32 from vector<1x1x1xf32>
    %231 = vector.extract_strided_slice %225 {offsets = [23, 0], sizes = [2, 128], strides = [1, 1]} : vector<32x128xf32> to vector<2x128xf32>
    %232 = vector.shape_cast %231 : vector<2x128xf32> to vector<1x2x128xf32>
    %cst_133 = arith.constant dense<0.000000e+00> : vector<1xf32>
    %233 = vector.multi_reduction <add>, %232, %cst_133 [1, 2] : vector<1x2x128xf32> to vector<1xf32>
    %234 = vector.shape_cast %233 : vector<1xf32> to vector<1x1x1xf32>
    %235 = vector.extract %234[0, 0, 0] : f32 from vector<1x1x1xf32>
    %236 = arith.mulf %2, %235 : f32
    %237 = arith.addf %230, %236 : f32
    %c5_134 = arith.constant 5 : index
    %c0_135 = arith.constant 0 : index
    %238 = vector.load %arg9[%c5_134, %c0_135] : memref<32x128xf32, #tpu.memory_space<vmem>>, vector<3x16xf32>
    tpu.vector_store %arg9[%c5_134, %c0_135], %148 {strides = array<i32>} : memref<32x128xf32, #tpu.memory_space<vmem>>, vector<3x16xf32>,
    %c8_136 = arith.constant 8 : index
    %c0_137 = arith.constant 0 : index
    %239 = vector.load %arg9[%c8_136, %c0_137] : memref<32x128xf32, #tpu.memory_space<vmem>>, vector<16x16xf32>
    tpu.vector_store %arg9[%c8_136, %c0_137], %6 {strides = array<i32>} : memref<32x128xf32, #tpu.memory_space<vmem>>, vector<16x16xf32>,
    %c5_138 = arith.constant 5 : index
    %c16_139 = arith.constant 16 : index
    %240 = vector.load %arg9[%c5_138, %c16_139] : memref<32x128xf32, #tpu.memory_space<vmem>>, vector<19x112xf32>
    tpu.vector_store %arg9[%c5_138, %c16_139], %177 {strides = array<i32>} : memref<32x128xf32, #tpu.memory_space<vmem>>, vector<19x112xf32>,
    %c24_140 = arith.constant 24 : index
    %c0_141 = arith.constant 0 : index
    %241 = vector.load %arg9[%c24_140, %c0_141] : memref<32x128xf32, #tpu.memory_space<vmem>>, vector<8x128xf32>
    tpu.vector_store %arg9[%c24_140, %c0_141], %178 {strides = array<i32>} : memref<32x128xf32, #tpu.memory_space<vmem>>, vector<8x128xf32>,
    %c5_142 = arith.constant 5 : index
    %c0_143 = arith.constant 0 : index
    %242 = vector.load %arg10[%c5_142, %c0_143] : memref<32x128xf32, #tpu.memory_space<vmem>>, vector<3x16xf32>
    tpu.vector_store %arg10[%c5_142, %c0_143], %148 {strides = array<i32>} : memref<32x128xf32, #tpu.memory_space<vmem>>, vector<3x16xf32>,
    %c8_144 = arith.constant 8 : index
    %c0_145 = arith.constant 0 : index
    %243 = vector.load %arg10[%c8_144, %c0_145] : memref<32x128xf32, #tpu.memory_space<vmem>>, vector<16x16xf32>
    tpu.vector_store %arg10[%c8_144, %c0_145], %176 {strides = array<i32>} : memref<32x128xf32, #tpu.memory_space<vmem>>, vector<16x16xf32>,
    %c5_146 = arith.constant 5 : index
    %c16_147 = arith.constant 16 : index
    %244 = vector.load %arg10[%c5_146, %c16_147] : memref<32x128xf32, #tpu.memory_space<vmem>>, vector<19x112xf32>
    tpu.vector_store %arg10[%c5_146, %c16_147], %177 {strides = array<i32>} : memref<32x128xf32, #tpu.memory_space<vmem>>, vector<19x112xf32>,
    %c24_148 = arith.constant 24 : index
    %c0_149 = arith.constant 0 : index
    %245 = vector.load %arg10[%c24_148, %c0_149] : memref<32x128xf32, #tpu.memory_space<vmem>>, vector<8x128xf32>
    tpu.vector_store %arg10[%c24_148, %c0_149], %178 {strides = array<i32>} : memref<32x128xf32, #tpu.memory_space<vmem>>, vector<8x128xf32>,
    %c0_150 = arith.constant 0 : index
    %c0_151 = arith.constant 0 : index
    %246 = vector.load %arg9[%c0_150, %c0_151] : memref<32x128xf32, #tpu.memory_space<vmem>>, vector<32x128xf32>
    %c0_152 = arith.constant 0 : index
    %c0_153 = arith.constant 0 : index
    %247 = vector.load %arg10[%c0_152, %c0_153] : memref<32x128xf32, #tpu.memory_space<vmem>>, vector<32x128xf32>
    %c1_i32_154 = arith.constant 1 : i32
    %248 = tpu.dynamic_rotate %246 by %c1_i32_154 dim 1 : vector<32x128xf32>, i32 -> vector<32x128xf32>
    %249 = arith.subf %246, %248 : vector<32x128xf32>
    %250 = math.absf %249 : vector<32x128xf32>
    %c1_i32_155 = arith.constant 1 : i32
    %251 = tpu.dynamic_rotate %247 by %c1_i32_155 dim 1 : vector<32x128xf32>, i32 -> vector<32x128xf32>
    %252 = arith.subf %247, %251 : vector<32x128xf32>
    %253 = math.absf %252 : vector<32x128xf32>
    %c1_i32_156 = arith.constant 1 : i32
    %254 = tpu.dynamic_rotate %253 by %c1_i32_156 dim 0 : vector<32x128xf32>, i32 -> vector<32x128xf32>
    %255 = arith.addf %254, %253 : vector<32x128xf32>
    %c31_i32_157 = arith.constant 31 : i32
    %256 = tpu.dynamic_rotate %253 by %c31_i32_157 dim 0 : vector<32x128xf32>, i32 -> vector<32x128xf32>
    %257 = arith.addf %255, %256 : vector<32x128xf32>
    %c1_i32_158 = arith.constant 1 : i32
    %258 = tpu.dynamic_rotate %257 by %c1_i32_158 dim 1 : vector<32x128xf32>, i32 -> vector<32x128xf32>
    %259 = arith.addf %258, %257 : vector<32x128xf32>
    %c127_i32_159 = arith.constant 127 : i32
    %260 = tpu.dynamic_rotate %257 by %c127_i32_159 dim 1 : vector<32x128xf32>, i32 -> vector<32x128xf32>
    %261 = arith.addf %259, %260 : vector<32x128xf32>
    %cst_160 = arith.constant 0.000000e+00 : f32
    %262 = vector.broadcast %cst_160 : f32 to vector<32x128xf32>
    %263 = arith.subf %262, %261 : vector<32x128xf32>
    %264 = math.exp %263 : vector<32x128xf32>
    %265 = arith.mulf %250, %264 : vector<32x128xf32>
    %c1_i32_161 = arith.constant 1 : i32
    %266 = tpu.dynamic_rotate %246 by %c1_i32_161 dim 0 : vector<32x128xf32>, i32 -> vector<32x128xf32>
    %267 = arith.subf %246, %266 : vector<32x128xf32>
    %268 = math.absf %267 : vector<32x128xf32>
    %c1_i32_162 = arith.constant 1 : i32
    %269 = tpu.dynamic_rotate %247 by %c1_i32_162 dim 0 : vector<32x128xf32>, i32 -> vector<32x128xf32>
    %270 = arith.subf %247, %269 : vector<32x128xf32>
    %271 = math.absf %270 : vector<32x128xf32>
    %c1_i32_163 = arith.constant 1 : i32
    %272 = tpu.dynamic_rotate %271 by %c1_i32_163 dim 0 : vector<32x128xf32>, i32 -> vector<32x128xf32>
    %273 = arith.addf %272, %271 : vector<32x128xf32>
    %c31_i32_164 = arith.constant 31 : i32
    %274 = tpu.dynamic_rotate %271 by %c31_i32_164 dim 0 : vector<32x128xf32>, i32 -> vector<32x128xf32>
    %275 = arith.addf %273, %274 : vector<32x128xf32>
    %c1_i32_165 = arith.constant 1 : i32
    %276 = tpu.dynamic_rotate %275 by %c1_i32_165 dim 1 : vector<32x128xf32>, i32 -> vector<32x128xf32>
    %277 = arith.addf %276, %275 : vector<32x128xf32>
    %c127_i32_166 = arith.constant 127 : i32
    %278 = tpu.dynamic_rotate %275 by %c127_i32_166 dim 1 : vector<32x128xf32>, i32 -> vector<32x128xf32>
    %279 = arith.addf %277, %278 : vector<32x128xf32>
    %cst_167 = arith.constant 0.000000e+00 : f32
    %280 = vector.broadcast %cst_167 : f32 to vector<32x128xf32>
    %281 = arith.subf %280, %279 : vector<32x128xf32>
    %282 = math.exp %281 : vector<32x128xf32>
    %283 = arith.mulf %268, %282 : vector<32x128xf32>
    %284 = arith.addf %265, %283 : vector<32x128xf32>
    %285 = vector.extract_strided_slice %284 {offsets = [7, 0], sizes = [16, 128], strides = [1, 1]} : vector<32x128xf32> to vector<16x128xf32>
    %286 = vector.shape_cast %285 : vector<16x128xf32> to vector<1x16x128xf32>
    %cst_168 = arith.constant dense<0.000000e+00> : vector<1xf32>
    %287 = vector.multi_reduction <add>, %286, %cst_168 [1, 2] : vector<1x16x128xf32> to vector<1xf32>
    %288 = vector.shape_cast %287 : vector<1xf32> to vector<1x1x1xf32>
    %289 = vector.extract %288[0, 0, 0] : f32 from vector<1x1x1xf32>
    %290 = vector.extract_strided_slice %284 {offsets = [23, 0], sizes = [2, 128], strides = [1, 1]} : vector<32x128xf32> to vector<2x128xf32>
    %291 = vector.shape_cast %290 : vector<2x128xf32> to vector<1x2x128xf32>
    %cst_169 = arith.constant dense<0.000000e+00> : vector<1xf32>
    %292 = vector.multi_reduction <add>, %291, %cst_169 [1, 2] : vector<1x2x128xf32> to vector<1xf32>
    %293 = vector.shape_cast %292 : vector<1xf32> to vector<1x1x1xf32>
    %294 = vector.extract %293[0, 0, 0] : f32 from vector<1x1x1xf32>
    %295 = arith.mulf %2, %294 : f32
    %296 = arith.addf %289, %295 : f32
    %297 = vector.broadcast %116 : f32 to vector<1x128xf32>
    %298 = vector.broadcast %124 : f32 to vector<1x128xf32>
    %299 = vector.broadcast %132 : f32 to vector<1x128xf32>
    %300 = vector.broadcast %140 : f32 to vector<1x128xf32>
    %301 = vector.broadcast %147 : f32 to vector<1x128xf32>
    %302 = vector.broadcast %237 : f32 to vector<1x128xf32>
    %303 = vector.broadcast %296 : f32 to vector<1x128xf32>
    %cst_170 = arith.constant 0.000000e+00 : f32
    %304 = vector.broadcast %cst_170 : f32 to vector<1x128xf32>
    %305 = tpu.concatenate %297, %298, %299, %300, %301, %302, %303, %304 in 0 : vector<1x128xf32>, vector<1x128xf32>, vector<1x128xf32>, vector<1x128xf32>, vector<1x128xf32>, vector<1x128xf32>, vector<1x128xf32>, vector<1x128xf32> -> vector<8x128xf32>
    %c0_171 = arith.constant 0 : index
    %c0_172 = arith.constant 0 : index
    %c0_173 = arith.constant 0 : index
    %c0_174 = arith.constant 0 : index
    %306 = vector.load %arg8[%c0_171, %c0_172, %c0_173, %c0_174] : memref<1x1x8x128xf32, #tpu.memory_space<vmem>>, vector<1x1x8x128xf32>
    %307 = vector.shape_cast %306 : vector<1x1x8x128xf32> to vector<8x128xf32>
    %308 = vector.shape_cast %305 : vector<8x128xf32> to vector<1x1x8x128xf32>
    tpu.vector_store %arg8[%c0_171, %c0_172, %c0_173, %c0_174], %308 {strides = array<i32>} : memref<1x1x8x128xf32, #tpu.memory_space<vmem>>, vector<1x1x8x128xf32>,
    return
  }
  func.func @transform_0(%arg0: i32, %arg1: i32) -> (i32, i32, i32, i32) {
    %c0_i32 = arith.constant 0 : i32
    %c0_i32_0 = arith.constant 0 : i32
    %c0_i32_1 = arith.constant 0 : i32
    return %arg0, %c0_i32, %arg1, %c0_i32_0 : i32, i32, i32, i32
  }
  func.func @transform_1(%arg0: i32, %arg1: i32) -> (i32, i32, i32, i32) {
    %c0_i32 = arith.constant 0 : i32
    %c0_i32_0 = arith.constant 0 : i32
    %c0_i32_1 = arith.constant 0 : i32
    return %arg0, %c0_i32, %arg1, %c0_i32_0 : i32, i32, i32, i32
  }
  func.func @transform_2(%arg0: i32, %arg1: i32) -> (i32, i32, i32, i32) {
    %c0_i32 = arith.constant 0 : i32
    %c0_i32_0 = arith.constant 0 : i32
    %c0_i32_1 = arith.constant 0 : i32
    return %arg0, %c0_i32, %arg1, %c0_i32_0 : i32, i32, i32, i32
  }
  func.func @transform_3(%arg0: i32, %arg1: i32) -> (i32, i32, i32, i32) {
    %c0_i32 = arith.constant 0 : i32
    %c0_i32_0 = arith.constant 0 : i32
    %c0_i32_1 = arith.constant 0 : i32
    return %arg0, %c0_i32, %arg1, %c0_i32_0 : i32, i32, i32, i32
  }
  func.func @transform_4(%arg0: i32, %arg1: i32) -> (i32, i32, i32, i32) {
    %c0_i32 = arith.constant 0 : i32
    %c0_i32_0 = arith.constant 0 : i32
    %c0_i32_1 = arith.constant 0 : i32
    return %arg0, %c0_i32, %arg1, %c0_i32_0 : i32, i32, i32, i32
  }
  func.func @transform_5(%arg0: i32, %arg1: i32) -> (i32, i32, i32, i32) {
    %c0_i32 = arith.constant 0 : i32
    %c0_i32_0 = arith.constant 0 : i32
    %c0_i32_1 = arith.constant 0 : i32
    return %arg0, %c0_i32, %arg1, %c0_i32_0 : i32, i32, i32, i32
  }
  func.func @transform_6(%arg0: i32, %arg1: i32) -> (i32, i32, i32, i32) {
    %c0_i32 = arith.constant 0 : i32
    %c0_i32_0 = arith.constant 0 : i32
    %c0_i32_1 = arith.constant 0 : i32
    return %arg0, %arg1, %c0_i32, %c0_i32_0 : i32, i32, i32, i32
  }
}

</mosaic_0001>

<bundles_post_ra>
// kernel: decom_loss.1
= control target key start
LH: loop header
LB: loop body
LE: loop exit
PB: predicated region body
PF: predicated region fallthrough
CT: control target
= control target key end

     0   :  { %s3059_s0 = inlined_call_operand.hbm [shape: f32[2,3,16,16], index: 0, kind: input, shape index: {}]   ;;  %s3060_s1 = inlined_call_operand.hbm [shape: f32[2,3,16,16], index: 1, kind: input, shape index: {}]   ;;  %s3061_s2 = inlined_call_operand.hbm [shape: f32[2,1,16,16], index: 2, kind: input, shape index: {}]   ;;  %s3062_s3 = inlined_call_operand.hbm [shape: f32[2,1,16,16], index: 3, kind: input, shape index: {}]   ;;  %s3063_s4 = inlined_call_operand.hbm [shape: f32[2,3,16,16], index: 4, kind: input, shape index: {}]   ;;  %s3064_s5 = inlined_call_operand.hbm [shape: f32[2,3,16,16], index: 5, kind: input, shape index: {}]   ;;  %s3065_s6 = inlined_call_operand.vmem [shape: f32[2,1,8,128], index: 6, kind: output, shape index: {}]  }
   0x1   :  { %3091 = sst [smem:[#allocation34_spill]] %s3060_s1 }
   0x2   :  { %3092 = sst [smem:[#allocation35_spill]] %s3062_s3 }
   0x3   :  { %3093 = sst [smem:[#allocation36_spill]] %s3065_s6 }
   0x4   :  { %11 = vsyncpa [#allocation5], 0 }
   0x5   :  { %13 = vsyncpa [#allocation5 + $0x1], 0 }
   0x6   :  { %14 = vsyncpa [#allocation7], 0 }
   0x7   :  { %16 = vsyncpa [#allocation7 + $0x1], 0 }
   0x8   :  { %17 = vsyncpa [#allocation10], 0 }
   0x9   :  { %19 = vsyncpa [#allocation10 + $0x1], 0 }
   0xa   :  { %20 = vsyncpa [#allocation13], 0 }
   0xb   :  { %22 = vsyncpa [#allocation13 + $0x1], 0  ;;  %s2093_s21 = smov 0   ;;  %s2095_s22 = smov 0  }
   0xc   :  { %s2097_s23 = smov 0   ;;  %s2099_s24 = smov 0  }
   0xd   :  { %s2101_s25 = smov 0   ;;  %s2103_s26 = smov 0  }
   0xe LB: > { %3094 = sst [smem:[#allocation18_spill]] %s2033_s23  ;;  %s3066_s27 = sadd.s32 4294967295, %s2045_s26   ;;  %s2045_s26 = sphi %s2103_s26, %s28_s26   ;;  %s2041_s25 = sphi %s2101_s25, %s3140_s25   ;;  %s2037_s24 = sphi %s2099_s24, %s3139_s24   ;;  %s2033_s23 = sphi %s2097_s23, %s3138_s23   ;;  %s2029_s22 = sphi %s2095_s22, %s3142_s22   ;;  %s2025_s21 = sphi %s2093_s21, %s3141_s21  }
   0xf   : > { %3095 = sst [smem:[#allocation19_spill]] %s2037_s24  ;;  %s40_s28 = sadd.s32 1, %s2041_s25 }
  0x10   : > { %3096 = sst [smem:[#allocation20_spill]] %s2041_s25  ;;  %p42_p0 = scmp.ge.s32.totalorder %s40_s28, 2 }
  0x11   : > { %3097 = sst [smem:[#allocation21_spill]] %s2045_s26  ;;  %s49_s29 = sadd.s32 1, %s2033_s23 }
  0x12   : > { %p56_p1 = scmp.ne.s32.totalorder %s2033_s23, %s2029_s22  ;;  %p57_p2 = scmp.eq.s32.totalorder %s2045_s26, 0 }
  0x13   : > { %s3144_s28 = smov (%p42_p0, %s40_s28), 0  ;;  %p62_p4 = scmp.ne.s32.totalorder %s2029_s22, %s2025_s21 }
  0x14   : > { %3098 = sst [smem:[#allocation22_spill]] %s3144_s28  ;;  %p58_p3 = por %p57_p2, %p56_p1 }
  0x15   : > { %s44_s30 = ssub.s32 %s2041_s25, %s3144_s28  ;;  %p63_p5 = scmp.eq.s32.totalorder %s3066_s27, 0 }
  0x16   : > { %p47_p6 = scmp.eq.s32.totalorder %s44_s30, 0  ;;  %p1716_p8 = scmp.lt.s32.totalorder %s2045_s26, 2 }
  0x17   : > { %p2134_p7 = por %p63_p5, %p62_p4  ;;  %s2143_s9 = sand.u32 1, %s2033_s23  }
  0x18   : > { %s2140_s8 = scalar_select %p47_p6, %s2033_s23, %s49_s29  }
  0x19   : > { %s3099_s7 = scalar_select %p2134_p7, 1, 0 }
  0x1a   : > { %3100 = sst [smem:[#allocation23_spill]] %s2140_s8  ;;  %s2146_s10 = smul.u32 768, %s2041_s25 }
  0x1b   : > { %s2149_s11 = smul.u32 48, %s2143_s9  ;;  %p2151_p9 = pnand %p1716_p8, %p58_p3 }
  0x1c   : > { %s3068_s13 = sand.u32 1, %s2045_s26   ;;  %s3102_s1 = sld [smem:[#allocation34_spill]] }
  0x1d   : > { %s281_s17 = scalar_lea.vmem [#allocation6], %s2149_s11  ;;  %s2168_s19 = scalar_lea.sflag [#allocation7], %s3068_s13 }
  0x1e   : > { %s290_s18 = sshll.u32 %s281_s17, 4  ;;  %p2174_p12 = pneg %p2151_p9  ;;  %s2163_s18 = int_to_ptr.vmem [resolvable:$true] %s290_s18 }
  0x22   : > { %s2160_s16 = scalar_lea.hbm %s3102_s1, %s2146_s10  ;;  %s1808_s14 = scalar_lea.hbm %s3102_s1, 1536 }
  0x23   : > { %s1803_s20 = scalar_lea.hbm %s2160_s16, 768  ;;  %p1809_p1 = scmp.lt.u32.totalorder %s2160_s16, %s3102_s1 }
  0x24   : > { %p1804_p11 = scmp.ne.s32.totalorder %s2160_s16, %s1803_s20  ;;  %p1810_p2 = scmp.lt.u32.totalorder %s1808_s14, %s1803_s20 }
  0x25   : > { %p1812_p4 = scmp.lt.u32.totalorder %s1803_s20, %s2160_s16 }
  0x26   : > { %p1806_p13 = pnand %p2174_p12, %p1804_p11  ;;  %p1811_p3 = por %p1810_p2, %p1809_p1 }
  0x28   : > { %p1807_p0 = pneg %p1806_p13  ;;  %p1813_p5 = por %p1812_p4, %p1811_p3 }
  0x2a   : > { %p1814_p6 = pnand %p1813_p5, %p1807_p0 }
  0x2c   : > { %1817 = shalt.err (!%p1814_p6)
}
  0x2d   : > { %s1818_s27 = scalar_lea.vmem %s2163_s18, 768  ;;  %s2047_s29 = smov [#allocation6]  }
  0x2e   : > { %p1819_p8 = scmp.ne.s32.totalorder %s2163_s18, %s1818_s27  ;;  %s1823_s30 = sshll.u32 %s2047_s29, 4  ;;  %s1824_s30 = int_to_ptr.vmem [resolvable:$false] %s1823_s30 }
  0x2f   : > { %s1825_s15 = scalar_lea.vmem %s1824_s30, 1536  ;;  %p1826_p10 = scmp.lt.s32.totalorder %s2163_s18, %s1824_s30 }
  0x30   : > { %p1821_p11 = pnand %p1819_p8, %p2174_p12  ;;  %p1827_p7 = scmp.lt.s32.totalorder %s1825_s15, %s1818_s27 }
  0x32   : > { %p1822_p13 = pneg %p1821_p11  ;;  %p1828_p1 = por %p1827_p7, %p1826_p10 }
  0x34   : > { %p1829_p2 = pnand %p1828_p1, %p1822_p13 }
  0x36   : > { %1832 = shalt.err (!%p1829_p2)
}
  0x37   : > { %s3070_s20 = smov 128   ;;  %s3072_s14 = smov 8  }
  0x38   : > { %1703 = dma.hbm_to_vmem [thread:$0]  (!%p2151_p9), %s2160_s16, 768, %s2163_s18, %s2168_s19, %s3070_s20, %s3070_s20, %s3072_s14  }
  0x39   : > { %p390_p7 = scmp.lt.s32.totalorder %s2045_s26, 3  ;;  %s1606_s27 = sshll.u32 %s2143_s9, 4 }
  0x3a   : > { %s1636_s17 = sshll.u32 %s2041_s25, 8  ;;  %p3104_p10 = scmp.ge.s32.totalorder %s2045_s26, 1 }
  0x3b   : > { %s2213_s13 = scalar_lea.hbm %s3061_s2, %s1636_s17  ;;  %s304_s1 = scalar_lea.vmem [#allocation8], %s1606_s27 }
  0x3c   : > { %p2206_p0 = pnand %p3104_p10, %p390_p7  ;;  %s313_s28 = sshll.u32 %s304_s1, 4  ;;  %s2215_s28 = int_to_ptr.vmem [resolvable:$true] %s313_s28 }
  0x3d   : > { %s3106_s3 = sld [smem:[#allocation35_spill]]  ;;  %s327_s20 = scalar_lea.vmem [#allocation9], %s1606_s27 }
  0x3e   : > { %s3105_s29 = scalar_select %p2206_p0, 1, 0 }
  0x3f   : > { %s336_s14 = sshll.u32 %s327_s20, 4  ;;  %s3107_s30 = sand.u32 1, %s2045_s26   ;;  %s2222_s14 = int_to_ptr.vmem [resolvable:$true] %s336_s14 }
  0x40   : > { %s2226_s15 = scalar_lea.sflag [#allocation10], %s3107_s30 }
  0x43   : > { %s2220_s18 = scalar_lea.hbm %s3106_s3, %s1636_s17  ;;  %s1838_s17 = scalar_lea.hbm %s3106_s3, 512 }
  0x44   : > { %s1833_s25 = scalar_lea.hbm %s2220_s18, 256  ;;  %p1839_p6 = scmp.lt.u32.totalorder %s2220_s18, %s3106_s3 }
  0x45   : > { %p1834_p3 = scmp.ne.s32.totalorder %s2220_s18, %s1833_s25  ;;  %p1840_p8 = scmp.lt.u32.totalorder %s1838_s17, %s1833_s25 }
  0x46   : > { %p1842_p13 = scmp.lt.u32.totalorder %s1833_s25, %s2220_s18 }
  0x47   : > { %p1836_p4 = pnand %p1834_p3, %p2174_p12  ;;  %p1841_p11 = por %p1840_p8, %p1839_p6 }
  0x49   : > { %p1837_p5 = pneg %p1836_p4  ;;  %p1843_p1 = por %p1842_p13, %p1841_p11 }
  0x4b   : > { %p1844_p2 = pnand %p1843_p1, %p1837_p5 }
  0x4d   : > { %1847 = shalt.err (!%p1844_p2)
}
  0x4e   : > { %s1848_s20 = scalar_lea.vmem %s2222_s14, 256  ;;  %s2050_s27 = smov [#allocation9]  }
  0x4f   : > { %p1849_p7 = scmp.ne.s32.totalorder %s2222_s14, %s1848_s20  ;;  %s1853_s30 = sshll.u32 %s2050_s27, 4  ;;  %s1854_s30 = int_to_ptr.vmem [resolvable:$false] %s1853_s30 }
  0x50   : > { %s1855_s23 = scalar_lea.vmem %s1854_s30, 512  ;;  %p1856_p4 = scmp.lt.s32.totalorder %s2222_s14, %s1854_s30 }
  0x51   : > { %p1851_p10 = pnand %p1849_p7, %p2174_p12  ;;  %p1857_p0 = scmp.lt.s32.totalorder %s1855_s23, %s1848_s20 }
  0x53   : > { %p1852_p3 = pneg %p1851_p10  ;;  %p1858_p6 = por %p1857_p0, %p1856_p4 }
  0x55   : > { %p1859_p8 = pnand %p1858_p6, %p1852_p3 }
  0x57   : > { %1862 = shalt.err (!%p1859_p8)
}
  0x58   : > { %s3108_s25 = smov 8   ;;  %s3109_s1 = smov 128  }
  0x59   : > { %1709 = dma.hbm_to_vmem [thread:$0]  (!%p2151_p9), %s2220_s18, 256, %s2222_s14, %s2226_s15, %s3109_s1, %s3109_s1, %s3108_s25  }
  0x5a   : > { %s2257_s16 = scalar_lea.hbm %s3059_s0, %s2146_s10  ;;  %s258_s20 = scalar_lea.vmem [#allocation4], %s2149_s11 }
  0x5b   : > { %s267_s27 = sshll.u32 %s258_s20, 4  ;;  %s2266_s3 = scalar_lea.hbm %s3063_s4, %s2146_s10  ;;  %s2260_s27 = int_to_ptr.vmem [resolvable:$true] %s267_s27 }
  0x5c   : > { %s255_s6 = scalar_lea.sflag [#allocation5], %s2143_s9  ;;  %s1863_s14 = scalar_lea.hbm %s2257_s16, 768 }
  0x5d   : > { %p1864_p0 = scmp.ne.s32.totalorder %s2257_s16, %s1863_s14  ;;  %s1868_s17 = scalar_lea.hbm %s3059_s0, 1536 }
  0x5e   : > { %p1869_p13 = scmp.lt.u32.totalorder %s2257_s16, %s3059_s0  ;;  %p1870_p1 = scmp.lt.u32.totalorder %s1868_s17, %s1863_s14 }
  0x5f   : > { %p1866_p5 = pnand %p1864_p0, %p2174_p12  ;;  %p1872_p7 = scmp.lt.u32.totalorder %s1863_s14, %s2257_s16 }
  0x60   : > { %p1871_p2 = por %p1870_p1, %p1869_p13 }
  0x61   : > { %p1867_p11 = pneg %p1866_p5 }
  0x62   : > { %p1873_p10 = por %p1872_p7, %p1871_p2 }
  0x64   : > { %p1874_p3 = pnand %p1873_p10, %p1867_p11 }
  0x66   : > { %1877 = shalt.err (!%p1874_p3)
}
  0x67   : > { %s1878_s20 = scalar_lea.vmem %s2260_s27, 768  ;;  %s2051_s30 = smov [#allocation4]  }
  0x68   : > { %p1879_p4 = scmp.ne.s32.totalorder %s2260_s27, %s1878_s20  ;;  %s1883_s23 = sshll.u32 %s2051_s30, 4  ;;  %s1884_s23 = int_to_ptr.vmem [resolvable:$false] %s1883_s23 }
  0x69   : > { %s1885_s24 = scalar_lea.vmem %s1884_s23, 1536  ;;  %p1886_p0 = scmp.lt.s32.totalorder %s2260_s27, %s1884_s23 }
  0x6a   : > { %p1881_p6 = pnand %p1879_p4, %p2174_p12  ;;  %p1887_p5 = scmp.lt.s32.totalorder %s1885_s24, %s1878_s20 }
  0x6c   : > { %p1882_p8 = pneg %p1881_p6  ;;  %p1888_p13 = por %p1887_p5, %p1886_p0 }
  0x6e   : > { %p1889_p1 = pnand %p1888_p13, %p1882_p8 }
  0x70   : > { %1892 = shalt.err (!%p1889_p1)
}
  0x71   : > { %1700 = dma.hbm_to_vmem [thread:$0]  (!%p2151_p9), %s2257_s16, 768, %s2260_s27, %s255_s6, %s3109_s1, %s3109_s1, %s3108_s25  }
  0x72   : > { %s1893_s26 = scalar_lea.hbm %s2213_s13, 256  ;;  %s1898_s8 = scalar_lea.hbm %s3061_s2, 512 }
  0x73   : > { %p1894_p11 = scmp.ne.s32.totalorder %s2213_s13, %s1893_s26  ;;  %p1899_p10 = scmp.lt.u32.totalorder %s2213_s13, %s3061_s2 }
  0x74   : > { %p1900_p3 = scmp.lt.u32.totalorder %s1898_s8, %s1893_s26  ;;  %p1902_p6 = scmp.lt.u32.totalorder %s1893_s26, %s2213_s13 }
  0x75   : > { %p1896_p2 = pnand %p1894_p11, %p2174_p12 }
  0x76   : > { %p1901_p4 = por %p1900_p3, %p1899_p10 }
  0x77   : > { %p1897_p7 = pneg %p1896_p2 }
  0x78   : > { %p1903_p8 = por %p1902_p6, %p1901_p4 }
  0x7a   : > { %p1904_p0 = pnand %p1903_p8, %p1897_p7 }
  0x7c   : > { %1907 = shalt.err (!%p1904_p0)
}
  0x7d   : > { %s1908_s6 = scalar_lea.vmem %s2215_s28, 256  ;;  %s2052_s16 = smov [#allocation8]  }
  0x7e   : > { %p1909_p5 = scmp.ne.s32.totalorder %s2215_s28, %s1908_s6  ;;  %s1913_s27 = sshll.u32 %s2052_s16, 4  ;;  %s1914_s27 = int_to_ptr.vmem [resolvable:$false] %s1913_s27 }
  0x7f   : > { %s1915_s30 = scalar_lea.vmem %s1914_s27, 512  ;;  %p1916_p11 = scmp.lt.s32.totalorder %s2215_s28, %s1914_s27 }
  0x80   : > { %p1911_p13 = pnand %p1909_p5, %p2174_p12  ;;  %p1917_p2 = scmp.lt.s32.totalorder %s1915_s30, %s1908_s6 }
  0x82   : > { %p1912_p1 = pneg %p1911_p13  ;;  %p1918_p10 = por %p1917_p2, %p1916_p11 }
  0x84   : > { %p1919_p3 = pnand %p1918_p10, %p1912_p1 }
  0x86   : > { %1922 = shalt.err (!%p1919_p3)
}
  0x87   : > { %1706 = dma.hbm_to_vmem [thread:$0]  (!%p2151_p9), %s2213_s13, 256, %s2215_s28, %s2168_s19, %s3109_s1, %s3109_s1, %s3108_s25  }
  0x88   : > { %s350_s23 = scalar_lea.vmem [#allocation11], %s2149_s11  ;;  %s1923_s26 = scalar_lea.hbm %s2266_s3, 768 }
  0x89   : > { %s359_s24 = sshll.u32 %s350_s23, 4  ;;  %p1924_p7 = scmp.ne.s32.totalorder %s2266_s3, %s1923_s26  ;;  %s2321_s24 = int_to_ptr.vmem [resolvable:$true] %s359_s24 }
  0x8a   : > { %s1928_s8 = scalar_lea.hbm %s3063_s4, 1536  ;;  %p1929_p8 = scmp.lt.u32.totalorder %s2266_s3, %s3063_s4 }
  0x8b   : > { %p1926_p4 = pnand %p1924_p7, %p2174_p12  ;;  %p1930_p0 = scmp.lt.u32.totalorder %s1928_s8, %s1923_s26 }
  0x8c   : > { %p1932_p13 = scmp.lt.u32.totalorder %s1923_s26, %s2266_s3 }
  0x8d   : > { %p1927_p6 = pneg %p1926_p4  ;;  %p1931_p5 = por %p1930_p0, %p1929_p8 }
  0x8f   : > { %p1933_p1 = por %p1932_p13, %p1931_p5 }
  0x91   : > { %p1934_p11 = pnand %p1933_p1, %p1927_p6 }
  0x93   : > { %1937 = shalt.err (!%p1934_p11)
}
  0x94   : > { %s1938_s28 = scalar_lea.vmem %s2321_s24, 768  ;;  %s2053_s13 = smov [#allocation11]  }
  0x95   : > { %p1939_p2 = scmp.ne.s32.totalorder %s2321_s24, %s1938_s28  ;;  %s1943_s19 = sshll.u32 %s2053_s13, 4  ;;  %s1944_s19 = int_to_ptr.vmem [resolvable:$false] %s1943_s19 }
  0x96   : > { %s1945_s6 = scalar_lea.vmem %s1944_s19, 1536  ;;  %p1946_p7 = scmp.lt.s32.totalorder %s2321_s24, %s1944_s19 }
  0x97   : > { %p1941_p10 = pnand %p1939_p2, %p2174_p12  ;;  %p1947_p4 = scmp.lt.s32.totalorder %s1945_s6, %s1938_s28 }
  0x99   : > { %p1942_p3 = pneg %p1941_p10  ;;  %p1948_p8 = por %p1947_p4, %p1946_p7 }
  0x9b   : > { %p1949_p0 = pnand %p1948_p8, %p1942_p3 }
  0x9d   : > { %1952 = shalt.err (!%p1949_p0)
}
  0x9e   : > { %1712 = dma.hbm_to_vmem [thread:$0]  (!%p2151_p9), %s2266_s3, 768, %s2321_s24, %s2226_s15, %s3109_s1, %s3109_s1, %s3108_s25  }
  0x9f   : > { %s2352_s30 = scalar_lea.hbm %s3064_s5, %s2146_s10  ;;  %s373_s23 = scalar_lea.vmem [#allocation12], %s2149_s11 }
  0xa0   : > { %s382_s26 = sshll.u32 %s373_s23, 4  ;;  %s370_s14 = scalar_lea.sflag [#allocation13], %s2143_s9  ;;  %s2355_s26 = int_to_ptr.vmem [resolvable:$true] %s382_s26 }
  0xa1   : > { %s1953_s18 = scalar_lea.hbm %s2352_s30, 768  ;;  %s1958_s24 = scalar_lea.hbm %s3064_s5, 1536 }
  0xa2   : > { %p1954_p6 = scmp.ne.s32.totalorder %s2352_s30, %s1953_s18  ;;  %p1959_p1 = scmp.lt.u32.totalorder %s2352_s30, %s3064_s5 }
  0xa3   : > { %p1960_p11 = scmp.lt.u32.totalorder %s1958_s24, %s1953_s18  ;;  %p1962_p10 = scmp.lt.u32.totalorder %s1953_s18, %s2352_s30 }
  0xa4   : > { %p1956_p5 = pnand %p1954_p6, %p2174_p12 }
  0xa5   : > { %p1961_p2 = por %p1960_p11, %p1959_p1 }
  0xa6   : > { %p1957_p13 = pneg %p1956_p5 }
  0xa7   : > { %p1963_p3 = por %p1962_p10, %p1961_p2 }
  0xa9   : > { %p1964_p7 = pnand %p1963_p3, %p1957_p13 }
  0xab   : > { %1967 = shalt.err (!%p1964_p7)
}
  0xac   : > { %s1968_s11 = scalar_lea.vmem %s2355_s26, 768  ;;  %s2054_s17 = smov [#allocation12]  }
  0xad   : > { %p1969_p4 = scmp.ne.s32.totalorder %s2355_s26, %s1968_s11  ;;  %s1973_s20 = sshll.u32 %s2054_s17, 4  ;;  %s1974_s20 = int_to_ptr.vmem [resolvable:$false] %s1973_s20 }
  0xae   : > { %s1975_s28 = scalar_lea.vmem %s1974_s20, 1536  ;;  %p1976_p6 = scmp.lt.s32.totalorder %s2355_s26, %s1974_s20 }
  0xaf   : > { %p1971_p8 = pnand %p1969_p4, %p2174_p12  ;;  %p1977_p5 = scmp.lt.s32.totalorder %s1975_s28, %s1968_s11 }
  0xb1   : > { %p1972_p0 = pneg %p1971_p8  ;;  %p1978_p1 = por %p1977_p5, %p1976_p6 }
  0xb3   : > { %p1979_p11 = pnand %p1978_p1, %p1972_p0 }
  0xb5   : > { %1982 = shalt.err (!%p1979_p11)
}
  0xb6   : > { %1715 = dma.hbm_to_vmem [thread:$0]  (!%p2151_p9), %s2352_s30, 768, %s2355_s26, %s370_s14, %s3109_s1, %s3109_s1, %s3108_s25  }
  0xb7   : > { %p3110_p12 = scmp.ne.s32.totalorder %s3105_s29, 0 }
  0xb9   : > { %394 = sbr.rel (%p3110_p12) target bundleno = 756 (0x2f4), region = 44 }
  0xc0   : > { %s396_s21 = sand.u32 1, %s2029_s22   ;;  %p3111_p13 = scmp.ne.s32.totalorder %s3099_s7, 0 }
  0xc1   : > { %s1646_s13 = smul.u32 48, %s396_s21  ;;  %s397_s19 = scalar_lea.sflag [#allocation5], %s396_s21 }
  0xc3   : > { %s2387_s6 = scalar_lea.vmem [#allocation4], %s1646_s13 }
  0xc4   : > { %2008 = dma.done.wait (%p3111_p13), %s397_s19, 768  }
  0xc5   : > { %2010 = vsyncadd (%p3111_p13), %s397_s19, 4294966528  ;;  %s3112_s12 = sld [smem:[#allocation21_spill]]  ;;  %s2395_s1 = scalar_lea.vmem [#allocation6], %s1646_s13 }
  0xcb   : > { %s3113_s9 = sadd.s32 4294967295, %s3112_s12  }
  0xcc   : > { %s405_s16 = sand.u32 1, %s3113_s9  }
  0xcd   : > { %s406_s25 = scalar_lea.sflag [#allocation7], %s405_s16 }
  0xce   : > { %2012 = dma.done.wait (%p3111_p13), %s406_s25, 1024  }
  0xcf   : > { %2014 = vsyncadd (%p3111_p13), %s406_s25, 4294966272  ;;  %s1615_s29 = sshll.u32 %s396_s21, 4  ;;  %s424_s30 = scalar_lea.sflag [#allocation10], %s405_s16 }
  0xd0   : > { %s2401_s27 = scalar_lea.vmem [#allocation8], %s1615_s29  ;;  %s2403_s23 = scalar_lea.vmem [#allocation9], %s1615_s29 }
  0xd1   : > { %2016 = dma.done.wait (%p3111_p13), %s424_s30, 1024  }
  0xd2   : > { %2018 = vsyncadd (%p3111_p13), %s424_s30, 4294966272  ;;  %s2409_s26 = scalar_lea.vmem [#allocation11], %s1646_s13  ;;  %s442_s14 = scalar_lea.sflag [#allocation13], %s396_s21 }
  0xd3   : > { %s2411_s18 = scalar_lea.vmem [#allocation12], %s1646_s13 }
  0xd4   : > { %2020 = dma.done.wait (%p3111_p13), %s442_s14, 768  }
  0xd5   : > { %2022 = vsyncadd (%p3111_p13), %s442_s14, 4294966528  ;;  %v2055_v0 = vmov 0.0   ;;  %s2056_s3 = smov 1   ;;  %vm853_vm0 = vcmask 124928   ;;  %v2425_v1 = vld [vmem:[%s2387_s6] sm:$0xff]  ;;  %v2428_v2 = vld [vmem:[%s2387_s6 + $0x8] sm:$0xff]  ;;  %v914_v29 = vlaneseq }
  0xd6   : > { %900 = vrot.lane.b32.xlu1 %v2055_v0, %s2056_s3  ;;  %1129 = vst [vmem:[#allocation3 + $0x18] sm:$0xff] %v2055_v0  ;;  %854 = vst.msk [vmem:[#allocation2 + $0x5] sm:$0x7] %vm853_vm0, %v2055_v0  ;;  %v2431_v3 = vld [vmem:[%s2395_s1 + $0x8] sm:$0xff]  ;;  %v2434_v4 = vld [vmem:[%s2387_s6 + $0x10] sm:$0xff]  ;;  %vm535_vm1 = vcmask 130048  }
  0xd7   : > { %863 = vst.msk [vmem:[#allocation3 + $0x5] sm:$0x7] %vm853_vm0, %v2055_v0  ;;  %v2437_v5 = vld [vmem:[%s2387_s6 + $0x18] sm:$0xff]  ;;  %v833_v6 = vmul.f32 0.33222222, %v2425_v1  ;;  %v2444_v8 = vld [vmem:[%s2387_s6 + $0x20] sm:$0xff] }
  0xd8   : > { %v2441_v7 = vld [vmem:[%s2395_s1 + $0x18] sm:$0xff]  ;;  %v2447_v9 = vld [vmem:[%s2387_s6 + $0x28] sm:$0xff]  ;;  %v834_v10 = vmul.f32 0.33222222, %v2428_v2  ;;  %v835_v11 = vmul.f32 0.6522222, %v2434_v4 }
  0xd9   : > { %v836_v12 = vmul.f32 0.6522222, %v2437_v5  ;;  %v839_v13 = vmul.f32 0.12666667, %v2444_v8  ;;  %v840_v14 = vmul.f32 0.12666667, %v2447_v9 }
  0xda   : > { %v844_v15 = vmul.f32 0.33222222, %v2431_v3  ;;  %v837_v16 = vadd.f32 %v835_v11, %v833_v6  ;;  %v846_v18 = vmul.f32 0.6522222, %v2441_v7  ;;  %v2457_v19 = vld [vmem:[%s2401_s27 + $0x8] sm:$0xff]  ;;  %v2460_v20 = vld [vmem:[%s2395_s1] sm:$0xff] }
  0xdb   : > { %v838_v17 = vadd.f32 %v836_v12, %v834_v10  ;;  %v2463_v21 = vld [vmem:[%s2395_s1 + $0x10] sm:$0xff]  ;;  %vm860_vm2 = vcmask 1042560   ;;  %856 = vst.msk [vmem:[#allocation2 + $0x10] sm:$0xff] %vm535_vm1, %v2457_v19  ;;  %v843_v22 = vmul.f32 0.33222222, %v2460_v20  ;;  %v2470_v24 = vld [vmem:[%s2401_s27] sm:$0xff] }
  0xdc   : > { %v845_v23 = vmul.f32 0.6522222, %v2463_v21  ;;  %v2473_v25 = vld [vmem:[%s2395_s1 + $0x28] sm:$0xff]  ;;  %v841_v26 = vadd.f32 %v839_v13, %v837_v16  ;;  %vm857_vm3 = vcmask 1047680   ;;  %861 = vst.msk [vmem:[#allocation2 + $0x15] sm:$0x7] %vm860_vm2, %v2055_v0  ;;  %v848_v30 = vadd.f32 %v846_v18, %v844_v15 }
  0xdd   : > { %v842_v27 = vadd.f32 %v840_v14, %v838_v17  ;;  %v2478_v28 = vld [vmem:[%s2395_s1 + $0x20] sm:$0xff]  ;;  %855 = vst.msk [vmem:[#allocation2 + $0x8] sm:$0xff] %vm535_vm1, %v2470_v24  ;;  %v850_v31 = vmul.f32 0.12666667, %v2473_v25  ;;  %v2496_v34 = vshrl.u32 %v914_v29, 7  ;;  %v2501_v38 = vrot.slane %v2055_v0, 7 }
  0xde   : > { %858 = vst.msk [vmem:[#allocation2 + $0x5] sm:$0xff] %vm857_vm3, %v2055_v0  ;;  %859 = vst.msk [vmem:[#allocation2 + $0xd] sm:$0xff] %vm857_vm3, %v2055_v0  ;;  %v847_v32 = vadd.f32 %v845_v23, %v843_v22  ;;  %v849_v33 = vmul.f32 0.12666667, %v2478_v28  ;;  %s2057_s7 = smov 127   ;;  %vm1081_vm6 = vcmask 1040384  }
  0xdf   : > { %864 = vst.msk [vmem:[#allocation3 + $0x8] sm:$0xff] %vm535_vm1, %v841_v26  ;;  %865 = vst.msk [vmem:[#allocation3 + $0x10] sm:$0xff] %vm535_vm1, %v842_v27  ;;  %v852_v35 = vadd.f32 %v850_v31, %v848_v30  ;;  %vm916_vm4 = vcmp.lt.s32.totalorder %v2496_v34, 1  ;;  %vm929_vm5 = vcmp.lt.s32.totalorder %v2496_v34, 7  ;;  %vm1103_vm7 = vcmask 1041408   ;;  %s3134_s13 = sld [smem:[#allocation19_spill]] }
  0xe0   : > { %867 = vst.msk [vmem:[#allocation3 + $0xd] sm:$0xff] %vm857_vm3, %v2055_v0  ;;  %866 = vst.msk [vmem:[#allocation3 + $0x5] sm:$0xff] %vm857_vm3, %v2055_v0  ;;  %v851_v36 = vadd.f32 %v849_v33, %v847_v32  ;;  %vm1379_vm8 = vcmask 1042432   ;;  %vm1381_vm9 = vcmask 1043456   ;;  %vm1383_vm10 = vcmask 1044480  }
  0xe1   : > { %868 = vst.msk [vmem:[#allocation3 + $0x15] sm:$0x7] %vm860_vm2, %v2055_v0  ;;  %3114 = vst [vmem:[#allocation24_spill] sm:$0xff] %v2496_v34  ;;  %vm1385_vm11 = vcmask 1045504   ;;  %vm1387_vm12 = vcmask 1046528  }
  0xe2   : > { %3115 = vst [vmem:[#allocation25_spill] sm:$0xff] %v2501_v38 }
  0xe5   : > { %v2498_v37 = vld [vmem:[#allocation2] sm:$0xff]  ;;  %p507_p9 = scmp.lt.s32.totalorder %s3134_s13, 1 }
  0xe6   : > { %1116 = vst.msk [vmem:[#allocation2 + $0x5] sm:$0x7] %vm853_vm0, %v2055_v0 }
  0xe7   : > { %v2508_v40 = vld [vmem:[#allocation3] sm:$0xff]  ;;  %v2510_v41 = vld [vmem:[#allocation3 + $0x8] sm:$0xff]  ;;  %s3146_s13 = smov (!%p507_p9, %s3134_s13), 1 }
  0xe8   : > { %v2505_v39 = vld [vmem:[#allocation3 + $0x10] sm:$0xff]  ;;  %894 = vrot.lane.b32.xlu0 %v2508_v40, %s2056_s3  ;;  %1123 = vst.msk [vmem:[#allocation3 + $0x5] sm:$0x7] %vm853_vm0, %v2055_v0  ;;  %v995_v43 = vrot.slane %v2510_v41, 7  ;;  %v994_v44 = vrot.slane %v2508_v40, 7 }
  0xe9   : > { %898 = vrot.lane.b32.xlu1 %v2505_v39, %s2056_s3  ;;  %v996_v42 = vrot.slane %v2505_v39, 7  ;;  %1125 = vst.msk [vmem:[#allocation3 + $0x10] sm:$0xff] %vm535_vm1, %v852_v35  ;;  %1124 = vst.msk [vmem:[#allocation3 + $0x8] sm:$0xff] %vm535_vm1, %v851_v36 }
  0xea   : > { %1128 = vst.msk [vmem:[#allocation3 + $0x15] sm:$0x7] %vm860_vm2, %v2055_v0  ;;  %v1000_v46 = vsel %vm916_vm4, %v994_v44, %v995_v43  ;;  %v1001_v47 = vsel %vm916_vm4, %v2501_v38, %v994_v44 }
  0xeb   : > { %1127 = vst.msk [vmem:[#allocation3 + $0xd] sm:$0xff] %vm857_vm3, %v2055_v0  ;;  %1126 = vst.msk [vmem:[#allocation3 + $0x5] sm:$0xff] %vm857_vm3, %v2055_v0  ;;  %v998_v45 = vsel %vm916_vm4, %v996_v42, %v2501_v38  ;;  %v999_v48 = vsel %vm916_vm4, %v995_v43, %v996_v42  ;;  %v1003_v49 = vsub.f32 %v2510_v41, %v1000_v46 }
  0xec   : > { %v1002_v50 = vsub.f32 %v2508_v40, %v1001_v47  ;;  %v1005_v51 = vsub.f32 0.0, %v998_v45  ;;  %v1004_v52 = vsub.f32 %v2505_v39, %v999_v48  ;;  %896 = vrot.lane.b32.xlu0 %v2510_v41, %s2056_s3 }
  0xed   : > { %v1007_v53 = vand.u32 2147483647, %v1003_v49 }
  0xee   : > { %v1006_v54 = vand.u32 2147483647, %v1002_v50  ;;  %v1009_v55 = vand.u32 2147483647, %v1005_v51  ;;  %v1008_v56 = vand.u32 2147483647, %v1004_v52 }
  0xef   : > { %v1023_v60 = vrot.slane %v1007_v53, 1  ;;  %v1011_v6 = vrot.slane %v1007_v53, 7  ;;  %v2596_v50 = vld [vmem:[%s2403_s23] sm:$0xff]  ;;  %v2599_v51 = vld [vmem:[%s2403_s23 + $0x8] sm:$0xff] }
  0xf0   : > { %v1010_v57 = vrot.slane %v1006_v54, 7  ;;  %v1013_v58 = vrot.slane %v1009_v55, 7  ;;  %v1022_v59 = vrot.slane %v1006_v54, 1  ;;  %v1012_v10 = vrot.slane %v1008_v56, 7  ;;  %v2601_v52 = vld [vmem:[#allocation2 + $0x8] sm:$0xff] }
  0xf1   : > { %v1024_v11 = vrot.slane %v1008_v56, 1  ;;  %v1025_v22 = vrot.slane %v1009_v55, 1  ;;  %1117 = vst.msk [vmem:[#allocation2 + $0x8] sm:$0xff] %vm535_vm1, %v2596_v50 }
  0xf2   : > { %v2545_v61 = vld [vmem:[#allocation3] sm:$0xff]  ;;  %v2547_v62 = vld [vmem:[#allocation3 + $0x8] sm:$0xff]  ;;  %v2549_v63 = vld [vmem:[#allocation3 + $0x10] sm:$0xff]  ;;  %v1017_v15 = vsel %vm916_vm4, %v1013_v58, %v1010_v57  ;;  %v1028_v17 = vsel %vm929_vm5, %v1022_v59, %v1023_v60  ;;  %v1015_v18 = vsel %vm916_vm4, %v1011_v6, %v1012_v10  ;;  %v1014_v35 = vsel %vm916_vm4, %v1012_v10, %v1013_v58  ;;  %1119 = vst.msk [vmem:[#allocation2 + $0x5] sm:$0xff] %vm857_vm3, %v2055_v0 }
  0xf3   : > { %1154 = vrot.lane.b32.xlu0 %v2545_v61, %s2056_s3  ;;  %v1250_v12 = vrot.slane %v2545_v61, 7  ;;  %1156 = vrot.lane.b32.xlu1 %v2547_v62, %s2056_s3  ;;  %v1251_v13 = vrot.slane %v2547_v62, 7  ;;  %v1252_v14 = vrot.slane %v2549_v63, 7  ;;  %v1018_v16 = vadd.f32 %v1017_v15, %v1006_v54 }
  0xf4   : > { %v1020_v31 = vadd.f32 %v1015_v18, %v1008_v56  ;;  %v1026_v33 = vsel %vm929_vm5, %v1024_v11, %v1025_v22  ;;  %v1016_v43 = vsel %vm916_vm4, %v1010_v57, %v1011_v6  ;;  %v1027_v44 = vsel %vm929_vm5, %v1023_v60, %v1024_v11 }
  0xf5   : > { %v1256_v23 = vsel %vm916_vm4, %v1250_v12, %v1251_v13  ;;  %v1254_v26 = vsel %vm916_vm4, %v1252_v14, %v2501_v38  ;;  %v1255_v29 = vsel %vm916_vm4, %v1251_v13, %v1252_v14  ;;  %v2576_v30 = vadd.f32 %v1028_v17, %v1018_v16 }
  0xf6   : > { %v1259_v27 = vsub.f32 %v2547_v62, %v1256_v23  ;;  %v1261_v32 = vsub.f32 0.0, %v1254_v26  ;;  %v1260_v36 = vsub.f32 %v2549_v63, %v1255_v29  ;;  %v1257_v42 = vsel %vm916_vm4, %v2501_v38, %v1250_v12 }
  0xf7   : > { %1158 = vrot.lane.b32.xlu0 %v2549_v63, %s2056_s3  ;;  %1160 = vrot.lane.b32.xlu1 %v2055_v0, %s2056_s3  ;;  %v1258_v46 = vsub.f32 %v2545_v61, %v1257_v42  ;;  %v1019_v47 = vadd.f32 %v1016_v43, %v1007_v53  ;;  %v2593_v48 = vadd.f32 %v1026_v33, %v1020_v31  ;;  %v2607_v53 = vld [vmem:[#allocation2 + $0x10] sm:$0xff] }
  0xf8   : > { %v1263_v45 = vand.u32 2147483647, %v1259_v27  ;;  %v1021_v49 = vadd.f32 %v1014_v35, %v1009_v55  ;;  %v1265_v54 = vand.u32 2147483647, %v1261_v32  ;;  %v1029_v56 = vsel %vm929_vm5, %v1025_v22, %v1022_v59  ;;  %3116 = vst [vmem:[#allocation26_spill] sm:$0xff] %v2607_v53  ;;  %1118 = vst.msk [vmem:[#allocation2 + $0x10] sm:$0xff] %vm535_vm1, %v2599_v51 }
  0xf9   : > { %v1262_v57 = vand.u32 2147483647, %v1258_v46  ;;  %v2605_v58 = vadd.f32 %v1027_v44, %v1019_v47  ;;  %v1264_v60 = vand.u32 2147483647, %v1260_v36  ;;  %1120 = vst.msk [vmem:[#allocation2 + $0xd] sm:$0xff] %vm857_vm3, %v2055_v0 }
  0xfa   : > { %v1279_v55 = vrot.slane %v1263_v45, 1  ;;  %1121 = vst.msk [vmem:[#allocation2 + $0x15] sm:$0x7] %vm860_vm2, %v2055_v0  ;;  %v2623_v59 = vadd.f32 %v1029_v56, %v1021_v49  ;;  %v1267_v10 = vrot.slane %v1263_v45, 7  ;;  %v1269_v12 = vrot.slane %v1265_v54, 7 }
  0xfb   : > { %1034 = vrot.lane.b32.xlu1 %v2576_v30, %s2056_s3  ;;  %1036 = vrot.lane.b32.xlu0 %v2605_v58, %s2056_s3  ;;  %v1266_v6 = vrot.slane %v1262_v57, 7  ;;  %v1280_v11 = vrot.slane %v1264_v60, 1  ;;  %v1278_v17 = vrot.slane %v1262_v57, 1  ;;  %v1268_v18 = vrot.slane %v1264_v60, 7 }
  0xfc   : > { %v1281_v29 = vrot.slane %v1265_v54, 1 }
  0xfd   : > { %v1272_v13 = vsel %vm916_vm4, %v1266_v6, %v1267_v10  ;;  %v1283_v14 = vsel %vm929_vm5, %v1279_v55, %v1280_v11  ;;  %v1273_v16 = vsel %vm916_vm4, %v1269_v12, %v1266_v6  ;;  %v1284_v26 = vsel %vm929_vm5, %v1278_v17, %v1279_v55 }
  0xfe   : > { %v1275_v15 = vadd.f32 %v1272_v13, %v1263_v45  ;;  %v1274_v23 = vadd.f32 %v1273_v16, %v1262_v57  ;;  %v1271_v27 = vsel %vm916_vm4, %v1267_v10, %v1268_v18  ;;  %v1282_v33 = vsel %vm929_vm5, %v1280_v11, %v1281_v29 }
  0xff   : > { %1038 = vrot.lane.b32.xlu1 %v2593_v48, %s2056_s3  ;;  %1048 = vrot.lane.b32.xlu0 %v2605_v58, %s2057_s7  ;;  %v1276_v32 = vadd.f32 %v1271_v27, %v1264_v60  ;;  %v1270_v35 = vsel %vm916_vm4, %v1268_v18, %v1269_v12  ;;  %v1285_v43 = vsel %vm929_vm5, %v1281_v29, %v1278_v17 }
 0x100   : > { %v2635_v22 = vadd.f32 %v1283_v14, %v1275_v15  ;;  %v2649_v31 = vadd.f32 %v1284_v26, %v1274_v23  ;;  %v1277_v42 = vadd.f32 %v1270_v35, %v1265_v54 }
 0x101   : > { %v2659_v36 = vadd.f32 %v1282_v33, %v1276_v32 }
 0x102   : > { %v2665_v44 = vadd.f32 %v1285_v43, %v1277_v42 }
 0x103   : > { %1040 = vrot.lane.b32.xlu1 %v2623_v59, %s2056_s3  ;;  %1292 = vrot.lane.b32.xlu0 %v2635_v22, %s2056_s3  ;;  %3117 = vst [vmem:[#allocation27_spill] sm:$0xff] %v2659_v36 }
 0x104   : > { %3118 = vst [vmem:[#allocation28_spill] sm:$0xff] %v2665_v44 }
 0x107   : > { %1046 = vrot.lane.b32.xlu1 %v2576_v30, %s2057_s7  ;;  %1304 = vrot.lane.b32.xlu0 %v2635_v22, %s2057_s7 }
 0x10b   : > { %1050 = vrot.lane.b32.xlu1 %v2593_v48, %s2057_s7  ;;  %878 = vrot.lane.b32.xlu0 %v2498_v37, %s2056_s3 }
 0x10f   : > { %1290 = vrot.lane.b32.xlu1 %v2649_v31, %s2056_s3 }
 0x113   : > { %1294 = vrot.lane.b32.xlu1 %v2659_v36, %s2056_s3 }
 0x117   : > { %1296 = vrot.lane.b32.xlu1 %v2665_v44, %s2056_s3 }
 0x11b   : > { %1052 = vrot.lane.b32.xlu1 %v2623_v59, %s2057_s7 }
 0x11f   : > { %1302 = vrot.lane.b32.xlu1 %v2649_v31, %s2057_s7 }
 0x123   : > { %1306 = vrot.lane.b32.xlu1 %v2659_v36, %s2057_s7 }
 0x127   : > { %1308 = vrot.lane.b32.xlu1 %v2665_v44, %s2057_s7 }
 0x148   : > { %v901_v45 = vpop.permute.xlu1 %900 }
 0x149   : > { %v905_v46 = vsub.f32 0.0, %v901_v45 }
 0x14b   : > { %v909_v47 = vand.u32 2147483647, %v905_v46 }
 0x14d   : > { %v913_v55 = vrot.slane %v909_v47, 7  ;;  %v928_v42 = vrot.slane %v909_v47, 1 }
 0x15a   : > { %v895_v54 = vpop.permute.xlu0 %894 }
 0x15b   : > { %v899_v49 = vpop.permute.xlu1 %898  ;;  %v902_v57 = vsub.f32 %v2508_v40, %v895_v54 }
 0x15c   : > { %v904_v56 = vsub.f32 %v2505_v39, %v899_v49 }
 0x15d   : > { %v906_v60 = vand.u32 2147483647, %v902_v57 }
 0x15e   : > { %v897_v6 = vpop.permute.xlu0 %896  ;;  %v908_v10 = vand.u32 2147483647, %v904_v56 }
 0x15f   : > { %v910_v11 = vrot.slane %v906_v60, 7  ;;  %v903_v12 = vsub.f32 %v2510_v41, %v897_v6  ;;  %v925_v16 = vrot.slane %v906_v60, 1 }
 0x160   : > { %v912_v15 = vrot.slane %v908_v10, 7  ;;  %v927_v27 = vrot.slane %v908_v10, 1 }
 0x161   : > { %v920_v13 = vsel %vm916_vm4, %v913_v55, %v910_v11  ;;  %v907_v14 = vand.u32 2147483647, %v903_v12 }
 0x162   : > { %v921_v29 = vadd.f32 %v920_v13, %v906_v60  ;;  %v917_v56 = vsel %vm916_vm4, %v912_v15, %v913_v55  ;;  %v930_v13 = vsel %vm929_vm5, %v927_v27, %v928_v42 }
 0x163   : > { %v911_v23 = vrot.slane %v907_v14, 7  ;;  %v926_v26 = vrot.slane %v907_v14, 1 }
 0x165   : > { %v1155_v17 = vpop.permute.xlu0 %1154  ;;  %v1157_v18 = vpop.permute.xlu1 %1156  ;;  %v919_v32 = vsel %vm916_vm4, %v910_v11, %v911_v23  ;;  %v932_v35 = vsel %vm929_vm5, %v925_v16, %v926_v26  ;;  %v931_v54 = vsel %vm929_vm5, %v926_v26, %v927_v27 }
 0x166   : > { %v1162_v39 = vsub.f32 %v2545_v61, %v1155_v17  ;;  %v1163_v40 = vsub.f32 %v2547_v62, %v1157_v18  ;;  %v922_v43 = vadd.f32 %v919_v32, %v907_v14  ;;  %v2688_v46 = vadd.f32 %v932_v35, %v921_v29 }
 0x167   : > { %v918_v61 = vsel %vm916_vm4, %v911_v23, %v912_v15 }
 0x168   : > { %v1166_v41 = vand.u32 2147483647, %v1162_v39  ;;  %v1167_v33 = vand.u32 2147483647, %v1163_v40  ;;  %938 = vrot.lane.b32.xlu0 %v2688_v46, %s2056_s3  ;;  %v2699_v60 = vadd.f32 %v931_v54, %v922_v43  ;;  %v923_v6 = vadd.f32 %v918_v61, %v908_v10 }
 0x169   : > { %v1159_v45 = vpop.permute.xlu0 %1158  ;;  %v1161_v11 = vpop.permute.xlu1 %1160  ;;  %v933_v10 = vsel %vm929_vm5, %v928_v42, %v925_v16 }
 0x16a   : > { %v1170_v49 = vrot.slane %v1166_v41, 7  ;;  %v1171_v62 = vrot.slane %v1167_v33, 7  ;;  %v1164_v57 = vsub.f32 %v2549_v63, %v1159_v45  ;;  %v1183_v14 = vrot.slane %v1167_v33, 1  ;;  %940 = vrot.lane.b32.xlu1 %v2699_v60, %s2056_s3 }
 0x16b   : > { %v2707_v55 = vadd.f32 %v930_v13, %v923_v6  ;;  %v924_v63 = vadd.f32 %v917_v56, %v909_v47  ;;  %v1165_v18 = vsub.f32 0.0, %v1161_v11  ;;  %v1182_v16 = vrot.slane %v1166_v41, 1  ;;  %v2781_v13 = vld [vmem:[%s2411_s18 + $0x8] sm:$0xff] }
 0x16c   : > { %v1176_v12 = vsel %vm916_vm4, %v1170_v49, %v1171_v62  ;;  %v1168_v17 = vand.u32 2147483647, %v1164_v57  ;;  %v549_v11 = vmul.f32 %v2460_v20, %v2596_v50 }
 0x16d   : > { %3119 = vst [vmem:[#allocation29_spill] sm:$0xff] %v2707_v55  ;;  %v1179_v15 = vadd.f32 %v1176_v12, %v1167_v33  ;;  %942 = vrot.lane.b32.xlu0 %v2707_v55, %s2056_s3  ;;  %v2715_v26 = vadd.f32 %v933_v10, %v924_v63  ;;  %v1169_v40 = vand.u32 2147483647, %v1165_v18  ;;  %v1188_v43 = vsel %vm929_vm5, %v1182_v16, %v1183_v14  ;;  %v2793_v18 = vld [vmem:[#allocation2 + $0x10] sm:$0xff] }
 0x16e   : > { %v1184_v23 = vrot.slane %v1168_v17, 1  ;;  %952 = vrot.lane.b32.xlu1 %v2699_v60, %s2057_s7  ;;  %v1172_v29 = vrot.slane %v1168_v17, 7  ;;  %v550_v12 = vmul.f32 %v2431_v3, %v2599_v51  ;;  %v607_v10 = vsub.f32 %v2428_v2, %v2431_v3 }
 0x16f   : > { %v1173_v47 = vrot.slane %v1169_v40, 7  ;;  %v1185_v42 = vrot.slane %v1169_v40, 1 }
 0x170   : > { %v1187_v39 = vsel %vm929_vm5, %v1183_v14, %v1184_v23  ;;  %v1175_v35 = vsel %vm916_vm4, %v1171_v62, %v1172_v29  ;;  %v2785_v14 = vld [vmem:[#allocation2] sm:$0xff]  ;;  %v552_v63 = vsub.f32 %v550_v12, %v2781_v13 }
 0x171   : > { %v2719_v27 = vadd.f32 %v1187_v39, %v1179_v15  ;;  %944 = vrot.lane.b32.xlu0 %v2715_v26, %s2056_s3  ;;  %v1177_v32 = vsel %vm916_vm4, %v1173_v47, %v1170_v49  ;;  %v1180_v45 = vadd.f32 %v1175_v35, %v1168_v17  ;;  %v1174_v49 = vsel %vm916_vm4, %v1172_v29, %v1173_v47  ;;  %v2789_v15 = vpop.permute.xlu1 %1034  ;;  %v1624_v29 = vld [vmem:[%s2411_s18 + $0x10] sm:$0xff] }
 0x172   : > { %v1178_v33 = vadd.f32 %v1177_v32, %v1166_v41  ;;  %v2747_v41 = vld [vmem:[#allocation2 + $0x8] sm:$0xff]  ;;  %v1186_v62 = vsel %vm929_vm5, %v1184_v23, %v1185_v42  ;;  %v1181_v54 = vadd.f32 %v1174_v49, %v1169_v40  ;;  %v1189_v57 = vsel %vm929_vm5, %v1185_v42, %v1182_v16 }
 0x173   : > { %3120 = vst [vmem:[#allocation30_spill] sm:$0xff] %v2719_v27  ;;  %1196 = vrot.lane.b32.xlu1 %v2719_v27, %s2056_s3  ;;  %v2755_v56 = vadd.f32 %v1186_v62, %v1180_v45  ;;  %v606_v23 = vsub.f32 %v2425_v1, %v2460_v20  ;;  %v554_v40 = vand.u32 2147483647, %v552_v63  ;;  %v654_v47 = vmul.f32 %v2463_v21, %v2596_v50  ;;  %v1625_v32 = vld [vmem:[%s2411_s18 + $0x18] sm:$0xff] }
 0x174   : > { %v2743_v61 = vadd.f32 %v1188_v43, %v1178_v33  ;;  %v2761_v6 = vadd.f32 %v1189_v57, %v1181_v54  ;;  %v655_v16 = vmul.f32 %v2441_v7, %v2599_v51  ;;  %v609_v42 = vand.u32 2147483647, %v607_v10 }
 0x175   : > { %950 = vrot.lane.b32.xlu0 %v2688_v46, %s2057_s7  ;;  %3122 = vst [vmem:[#allocation32_spill] sm:$0xff] %v2755_v56  ;;  %v2807_v33 = vpop.permute.xlu1 %1038  ;;  %v608_v35 = vand.u32 2147483647, %v606_v23  ;;  %v556_v45 = vsel %vm535_vm1, %v554_v40, 0.0  ;;  %v656_v49 = vsub.f32 %v654_v47, %v1624_v29  ;;  %v692_v54 = vmul.f32 %v2434_v4, %v2596_v50 }
 0x176   : > { %3121 = vst [vmem:[#allocation31_spill] sm:$0xff] %v2743_v61  ;;  %3123 = vst [vmem:[#allocation33_spill] sm:$0xff] %v2761_v6  ;;  %v657_v62 = vsub.f32 %v655_v16, %v1625_v32  ;;  %v693_v57 = vmul.f32 %v2437_v5, %v2599_v51  ;;  %v740_v10 = vmul.f32 %v2444_v8, %v2470_v24 }
 0x177   : > { %1208 = vrot.lane.b32.xlu1 %v2719_v27, %s2057_s7  ;;  %v610_v12 = vsel %vm535_vm1, %v608_v35, 0.0  ;;  %v658_v63 = vand.u32 2147483647, %v656_v49  ;;  %v694_v47 = vsub.f32 %v692_v54, %v1624_v29  ;;  %v525_v35 = vld [vmem:[%s2409_s26] sm:$0xff]  ;;  %v526_v49 = vld [vmem:[%s2409_s26 + $0x8] sm:$0xff]  ;;  %v778_v54 = vmul.f32 %v2478_v28, %v2470_v24 }
 0x178   : > { %v659_v23 = vand.u32 2147483647, %v657_v62  ;;  %v695_v16 = vsub.f32 %v693_v57, %v1625_v32  ;;  %v779_v57 = vmul.f32 %v2473_v25, %v2457_v19 }
 0x179   : > { %954 = vrot.lane.b32.xlu0 %v2707_v55, %s2057_s7  ;;  %v2821_v40 = vpop.permute.xlu1 %1040  ;;  %v660_v62 = vsel %vm535_vm1, %v658_v63, 0.0  ;;  %v696_v29 = vand.u32 2147483647, %v694_v47 }
 0x17a   : > { %v697_v32 = vand.u32 2147483647, %v695_v16 }
 0x17b   : > { %880 = vrot.lane.b32.xlu1 %v2601_v52, %s2056_s3 }
 0x17c   : > { %v699_v47 = vsel %vm535_vm1, %v697_v32, 0.0 }
 0x17d   : > { %956 = vrot.lane.b32.xlu0 %v2715_v26, %s2057_s7  ;;  %v2837_v27 = vpop.permute.xlu1 %1046 }
 0x17f   : > { %884 = vrot.lane.b32.xlu1 %v2055_v0, %s2056_s3 }
 0x181   : > { %1194 = vrot.lane.b32.xlu0 %v2743_v61, %s2056_s3 }
 0x183   : > { %1140 = vrot.lane.b32.xlu1 %v2747_v41, %s2056_s3 }
 0x185   : > { %1198 = vrot.lane.b32.xlu0 %v2755_v56, %s2056_s3 }
 0x187   : > { %1144 = vrot.lane.b32.xlu1 %v2055_v0, %s2056_s3  ;;  %v2778_v0 = vld [vmem:[%s2411_s18] sm:$0xff] }
 0x188   : > { %v551_v17 = vsub.f32 %v549_v11, %v2778_v0 }
 0x189   : > { %1200 = vrot.lane.b32.xlu0 %v2761_v6, %s2056_s3 }
 0x18a   : > { %v553_v39 = vand.u32 2147483647, %v551_v17  ;;  %v611_v17 = vsel %vm535_vm1, %v609_v42, 0.0  ;;  %v530_v42 = vmul.f32 %v2428_v2, %v2457_v19 }
 0x18c   : > { %v555_v43 = vsel %vm535_vm1, %v553_v39, 0.0  ;;  %v741_v39 = vmul.f32 %v2447_v9, %v2457_v19 }
 0x18d   : > { %1206 = vrot.lane.b32.xlu0 %v2743_v61, %s2057_s7  ;;  %v557_v11 = vadd.f32 %v556_v45, %v555_v43  ;;  %v529_v43 = vmul.f32 %v2425_v1, %v2470_v24  ;;  %v612_v45 = vadd.f32 %v611_v17, %v610_v12  ;;  %v532_v12 = vsub.f32 %v530_v42, %v526_v49 }
 0x18e   : > { %v569_v17 = vmul.f32 %v2431_v3, %v2457_v19  ;;  %v588_v3 = vmul.f32 %v2428_v2, %v2599_v51 }
 0x18f   : > { %v531_v36 = vsub.f32 %v529_v43, %v525_v35  ;;  %v534_v55 = vand.u32 2147483647, %v532_v12  ;;  %v636_v12 = vmul.f32 %v2437_v5, %v2457_v19 }
 0x190   : > { %v571_v42 = vsub.f32 %v569_v17, %v526_v49  ;;  %v590_v32 = vsub.f32 %v588_v3, %v2781_v13  ;;  %v674_v3 = vmul.f32 %v2441_v7, %v2457_v19 }
 0x191   : > { %1210 = vrot.lane.b32.xlu0 %v2755_v56, %s2057_s7  ;;  %v1631_v56 = vld [vmem:[%s2409_s26 + $0x28] sm:$0xff]  ;;  %v533_v43 = vand.u32 2147483647, %v531_v36 }
 0x192   : > { %v743_v44 = vsub.f32 %v741_v39, %v1631_v56  ;;  %v698_v39 = vsel %vm535_vm1, %v696_v29, 0.0  ;;  %v781_v38 = vsub.f32 %v779_v57, %v1631_v56  ;;  %v1623_v57 = vld [vmem:[%s2409_s26 + $0x18] sm:$0xff] }
 0x193   : > { %v536_v2 = vsel %vm535_vm1, %v533_v43, 0.0  ;;  %v638_v43 = vsub.f32 %v636_v12, %v1623_v57 }
 0x194   : > { %v783_v56 = vand.u32 2147483647, %v781_v38  ;;  %v635_v38 = vmul.f32 %v2434_v4, %v2470_v24 }
 0x195   : > { %1212 = vrot.lane.b32.xlu0 %v2761_v6, %s2057_s7  ;;  %v1630_v6 = vld [vmem:[%s2409_s26 + $0x20] sm:$0xff] }
 0x196   : > { %v742_v61 = vsub.f32 %v740_v10, %v1630_v6  ;;  %v745_v10 = vand.u32 2147483647, %v743_v44  ;;  %v780_v16 = vsub.f32 %v778_v54, %v1630_v6  ;;  %v2851_v6 = vpop.permute.xlu1 %1050  ;;  %v1622_v54 = vld [vmem:[%s2409_s26 + $0x10] sm:$0xff] }
 0x198   : > { %v782_v36 = vand.u32 2147483647, %v780_v16  ;;  %v637_v16 = vsub.f32 %v635_v38, %v1622_v54 }
 0x199   : > { %882 = vrot.lane.b32.xlu0 %v2607_v53, %s2056_s3  ;;  %v661_v53 = vsel %vm535_vm1, %v659_v23, 0.0  ;;  %v744_v23 = vand.u32 2147483647, %v742_v61  ;;  %v747_v61 = vsel %vm535_vm1, %v745_v10, 0.0 }
 0x19a   : > { %v662_v63 = vadd.f32 %v661_v53, %v660_v62  ;;  %v700_v53 = vadd.f32 %v699_v47, %v698_v39  ;;  %v573_v62 = vand.u32 2147483647, %v571_v42  ;;  %v784_v17 = vsel %vm535_vm1, %v782_v36, 0.0 }
 0x19b   : > { %v746_v44 = vsel %vm535_vm1, %v744_v23, 0.0  ;;  %v2869_v23 = vpop.permute.xlu1 %1290  ;;  %v592_v47 = vand.u32 2147483647, %v590_v32 }
 0x19c   : > { %v575_v10 = vsel %vm535_vm1, %v573_v62, 0.0 }
 0x19d   : > { %1138 = vrot.lane.b32.xlu0 %v2785_v14, %s2056_s3 }
 0x1a1   : > { %1142 = vrot.lane.b32.xlu0 %v2793_v18, %s2056_s3 }
 0x1ab   : > { %558 = vadd.xlane.f32.xlu1 %v557_v11  ;;  %v568_v11 = vmul.f32 %v2460_v20, %v2470_v24  ;;  %v587_v20 = vmul.f32 %v2425_v1, %v2596_v50  ;;  %v817_v1 = vsub.f32 %v2447_v9, %v2473_v25 }
 0x1ad   : > { %v570_v34 = vsub.f32 %v568_v11, %v525_v35  ;;  %v816_v35 = vsub.f32 %v2444_v8, %v2478_v28  ;;  %v589_v29 = vsub.f32 %v587_v20, %v2778_v0  ;;  %v748_v11 = vadd.f32 %v747_v61, %v746_v44  ;;  %v2879_v61 = vpop.permute.xlu0 %1036 }
 0x1ae   : > { %v673_v20 = vmul.f32 %v2463_v21, %v2470_v24  ;;  %v594_v24 = vsel %vm535_vm1, %v592_v47, 0.0 }
 0x1af   : > { %613 = vadd.xlane.f32.xlu1 %v612_v45  ;;  %v537_v45 = vsel %vm535_vm1, %v534_v55, 0.0  ;;  %v572_v49 = vand.u32 2147483647, %v570_v34  ;;  %v785_v55 = vsel %vm535_vm1, %v783_v56, 0.0  ;;  %v818_v34 = vand.u32 2147483647, %v816_v35 }
 0x1b0   : > { %v538_v0 = vadd.f32 %v537_v45, %v536_v2  ;;  %v591_v39 = vand.u32 2147483647, %v589_v29  ;;  %v786_v42 = vadd.f32 %v785_v55, %v784_v17  ;;  %v639_v56 = vand.u32 2147483647, %v637_v16  ;;  %v2881_v2 = vpop.permute.xlu1 %1294 }
 0x1b1   : > { %v574_v13 = vsel %vm535_vm1, %v572_v49, 0.0  ;;  %v640_v35 = vand.u32 2147483647, %v638_v43  ;;  %v675_v19 = vsub.f32 %v673_v20, %v1622_v54  ;;  %v676_v49 = vsub.f32 %v674_v3, %v1623_v57  ;;  %v2891_v55 = vpop.permute.xlu0 %1048 }
 0x1b2   : > { %v576_v36 = vadd.f32 %v575_v10, %v574_v13  ;;  %v593_v45 = vsel %vm535_vm1, %v591_v39, 0.0  ;;  %v641_v29 = vsel %vm535_vm1, %v639_v56, 0.0  ;;  %v712_v17 = vsub.f32 %v2437_v5, %v2441_v7 }
 0x1b3   : > { %663 = vadd.xlane.f32.xlu1 %v662_v63  ;;  %v819_v63 = vand.u32 2147483647, %v817_v1  ;;  %v595_v62 = vadd.f32 %v594_v24, %v593_v45  ;;  %v642_v32 = vsel %vm535_vm1, %v640_v35, 0.0  ;;  %v677_v38 = vand.u32 2147483647, %v675_v19 }
 0x1b4   : > { %v678_v12 = vand.u32 2147483647, %v676_v49  ;;  %v759_v54 = vmul.f32 %v2478_v28, %v2596_v50  ;;  %v760_v57 = vmul.f32 %v2473_v25, %v2599_v51  ;;  %v643_v13 = vadd.f32 %v642_v32, %v641_v29 }
 0x1b5   : > { %v821_v44 = vsel %vm535_vm1, %v819_v63, 0.0  ;;  %v1632_v63 = vld [vmem:[%s2411_s18 + $0x20] sm:$0xff]  ;;  %v679_v10 = vsel %vm535_vm1, %v677_v38, 0.0  ;;  %v714_v5 = vand.u32 2147483647, %v712_v17  ;;  %v797_v28 = vmul.f32 %v2444_v8, %v2596_v50  ;;  %v1293_v47 = vpop.permute.xlu0 %1292 }
 0x1b6   : > { %v761_v7 = vsub.f32 %v759_v54, %v1632_v63  ;;  %v798_v25 = vmul.f32 %v2447_v9, %v2599_v51 }
 0x1b7   : > { %701 = vadd.xlane.f32.xlu1 %v700_v53  ;;  %v820_v53 = vsel %vm535_vm1, %v818_v34, 0.0  ;;  %v2897_v34 = vpop.permute.xlu1 %1296  ;;  %v716_v20 = vsel %vm535_vm1, %v714_v5, 0.0 }
 0x1b8   : > { %v822_v1 = vadd.f32 %v821_v44, %v820_v53  ;;  %v763_v3 = vand.u32 2147483647, %v761_v7  ;;  %v799_v44 = vsub.f32 %v797_v28, %v1632_v63 }
 0x1b9   : > { %v2909_v35 = vpop.permute.xlu0 %1304 }
 0x1ba   : > { %v765_v8 = vsel %vm535_vm1, %v763_v3, 0.0  ;;  %v801_v50 = vand.u32 2147483647, %v799_v44 }
 0x1bb   : > { %749 = vadd.xlane.f32.xlu1 %v748_v11  ;;  %v711_v11 = vsub.f32 %v2434_v4, %v2463_v21  ;;  %v680_v4 = vsel %vm535_vm1, %v678_v12, 0.0  ;;  %v1053_v16 = vpop.permute.xlu1 %1052 }
 0x1bc   : > { %v681_v43 = vadd.f32 %v680_v4, %v679_v10  ;;  %v803_v19 = vsel %vm535_vm1, %v801_v50, 0.0  ;;  %v1043_v4 = vadd.f32 %v2879_v61, %v2605_v58  ;;  %v1044_v58 = vadd.f32 %v2807_v33, %v2593_v48 }
 0x1bd   : > { %v713_v21 = vand.u32 2147483647, %v711_v11  ;;  %v2913_v24 = vpop.permute.xlu0 %878 }
 0x1bf   : > { %787 = vadd.xlane.f32.xlu1 %v786_v42  ;;  %v715_v42 = vsel %vm535_vm1, %v713_v21, 0.0 }
 0x1c0   : > { %539 = vadd.xlane.f32.xlu0 %v538_v0  ;;  %v1633_v0 = vld [vmem:[%s2411_s18 + $0x28] sm:$0xff]  ;;  %v717_v56 = vadd.f32 %v716_v20, %v715_v42  ;;  %v1235_v42 = vrot.slane %v2747_v41, 7  ;;  %v1299_v20 = vadd.f32 %v1293_v47, %v2635_v22  ;;  %v1056_v22 = vadd.f32 %v2851_v6, %v1044_v58 }
 0x1c1   : > { %v762_v39 = vsub.f32 %v760_v57, %v1633_v0 }
 0x1c3   : > { %823 = vadd.xlane.f32.xlu1 %v822_v1  ;;  %v764_v53 = vand.u32 2147483647, %v762_v39  ;;  %v1303_v1 = vpop.permute.xlu1 %1302  ;;  %v1045_v39 = vadd.f32 %v2821_v40, %v2623_v59  ;;  %v1298_v59 = vadd.f32 %v2869_v23, %v2649_v31  ;;  %v3125_v23 = vld [vmem:[#allocation29_spill] sm:$0xff] }
 0x1c4   : > { %577 = vadd.xlane.f32.xlu0 %v576_v36  ;;  %v800_v36 = vsub.f32 %v798_v25, %v1633_v0  ;;  %v1042_v0 = vadd.f32 %v2789_v15, %v2576_v30  ;;  %v1236_v30 = vrot.slane %v2793_v18, 7  ;;  %v978_v15 = vrot.slane %v2498_v37, 7 }
 0x1c5   : > { %v766_v9 = vsel %vm535_vm1, %v764_v53, 0.0  ;;  %v1057_v3 = vadd.f32 %v1053_v16, %v1045_v39  ;;  %v1234_v53 = vrot.slane %v2785_v14, 7  ;;  %v1310_v50 = vadd.f32 %v1303_v1, %v1298_v59 }
 0x1c6   : > { %v802_v51 = vand.u32 2147483647, %v800_v36  ;;  %v767_v45 = vadd.f32 %v766_v9, %v765_v8  ;;  %v1054_v28 = vadd.f32 %v2837_v27, %v1042_v0  ;;  %v1055_v27 = vadd.f32 %v2891_v55, %v1043_v4  ;;  %v3128_v0 = vld [vmem:[#allocation27_spill] sm:$0xff] }
 0x1c7   : > { %v2948_v33 = vsel %vm916_vm4, %v1235_v42, %v1236_v30 }
 0x1c8   : > { %596 = vadd.xlane.f32.xlu0 %v595_v62  ;;  %v804_v49 = vsel %vm535_vm1, %v802_v51, 0.0  ;;  %v2917_v62 = vpop.permute.xlu1 %1306  ;;  %v1058_v40 = vsub.f32 0.0, %v1054_v28  ;;  %v1059_v9 = vsub.f32 0.0, %v1055_v27  ;;  %v3127_v51 = vld [vmem:[#allocation30_spill] sm:$0xff]  ;;  %v1244_v6 = vsub.f32 %v2793_v18, %v2948_v33 }
 0x1c9   : > { %v805_v29 = vadd.f32 %v804_v49, %v803_v19  ;;  %v3131_v27 = vld [vmem:[#allocation26_spill] sm:$0xff] }
 0x1ca   : > { %v1062_v49 = vmul.f32 1.442695, %v1058_v40 }
 0x1cc   : > { %644 = vadd.xlane.f32.xlu0 %v643_v13  ;;  %v2919_v38 = vpop.permute.xlu1 %1308 }
 0x1d0   : > { %682 = vadd.xlane.f32.xlu0 %v681_v43  ;;  %v979_v43 = vrot.slane %v2601_v52, 7 }
 0x1d2   : > { %v984_v31 = vsel %vm916_vm4, %v978_v15, %v979_v43 }
 0x1d4   : > { %718 = vadd.xlane.f32.xlu0 %v717_v56  ;;  %v3126_v56 = vld [vmem:[#allocation25_spill] sm:$0xff] }
 0x1d5   : > { %v2959_v8 = vsel %vm916_vm4, %v3126_v56, %v978_v15 }
 0x1d6   : > { %v986_v4 = vsub.f32 %v2498_v37, %v2959_v8 }
 0x1d8   : > { %768 = vadd.xlane.f32.xlu0 %v767_v45 }
 0x1da   : > { %v939_v32 = vpop.permute.xlu0 %938 }
 0x1db   : > { %v946_v13 = vadd.f32 %v939_v32, %v2688_v46  ;;  %v1311_v32 = vadd.f32 %v2909_v35, %v1299_v20 }
 0x1dc   : > { %806 = vadd.xlane.f32.xlu0 %v805_v29  ;;  %v941_v17 = vpop.permute.xlu1 %940  ;;  %v1061_v29 = vsub.f32 0.0, %v1057_v3 }
 0x1dd   : > { %v947_v21 = vadd.f32 %v941_v17, %v2699_v60  ;;  %v1315_v28 = vsub.f32 0.0, %v1311_v32  ;;  %v3133_v32 = vld [vmem:[#allocation33_spill] sm:$0xff] }
 0x1de   : > { %v1068_v39 = vmul.f32 1.442695, %v1061_v29 }
 0x1df   : > { %v943_v12 = vpop.permute.xlu0 %942 }
 0x1e0   : > { %v953_v57 = vpop.permute.xlu1 %952  ;;  %v948_v55 = vadd.f32 %v943_v12, %v3125_v23  ;;  %v3132_v23 = vld [vmem:[#allocation32_spill] sm:$0xff] }
 0x1e1   : > { %v959_v46 = vadd.f32 %v953_v57, %v947_v21  ;;  %v1060_v57 = vsub.f32 0.0, %v1056_v22  ;;  %v1064_v21 = vmul.f32 1.442695, %v1059_v9 }
 0x1e3   : > { %v945_v11 = vpop.permute.xlu0 %944  ;;  %v963_v44 = vsub.f32 0.0, %v959_v46 }
 0x1e4   : > { %v949_v25 = vadd.f32 %v945_v11, %v2715_v26 }
 0x1e5   : > { %v1197_v5 = vpop.permute.xlu1 %1196  ;;  %v968_v12 = vmul.f32 1.442695, %v963_v44  ;;  %v1320_v44 = vmul.f32 1.442695, %v1315_v28 }
 0x1e6   : > { %v1203_v45 = vadd.f32 %v1197_v5, %v3127_v51  ;;  %v3129_v5 = vld [vmem:[#allocation28_spill] sm:$0xff] }
 0x1e7   : > { %v951_v54 = vpop.permute.xlu0 %950  ;;  %v1301_v35 = vadd.f32 %v2897_v34, %v3129_v5 }
 0x1e8   : > { %v958_v7 = vadd.f32 %v951_v54, %v946_v13  ;;  %v987_v54 = vsub.f32 %v2601_v52, %v984_v31  ;;  %v1300_v13 = vadd.f32 %v2881_v2, %v3128_v0  ;;  %v3130_v2 = vld [vmem:[#allocation31_spill] sm:$0xff]  ;;  %v1241_v0 = vsel %vm916_vm4, %v3126_v56, %v1234_v53 }
 0x1e9   : > { %v1209_v36 = vpop.permute.xlu1 %1208  ;;  %v1313_v20 = vadd.f32 %v2919_v38, %v1301_v35 }
 0x1ea   : > { %v962_v26 = vsub.f32 0.0, %v958_v7  ;;  %v1215_v17 = vadd.f32 %v1209_v36, %v1203_v45  ;;  %v2972_v15 = vand.u32 2147483647, %v987_v54  ;;  %v1312_v59 = vadd.f32 %v2917_v62, %v1300_v13 }
 0x1eb   : > { %v955_v63 = vpop.permute.xlu0 %954  ;;  %v886_v36 = vsub.f32 %v2498_v37, %v2913_v24  ;;  %v1317_v24 = vsub.f32 0.0, %v1313_v20  ;;  %v990_v13 = vand.u32 2147483647, %v986_v4 }
 0x1ec   : > { %v966_v19 = vmul.f32 1.442695, %v962_v26  ;;  %v960_v11 = vadd.f32 %v955_v63, %v948_v55  ;;  %v1314_v63 = vsub.f32 0.0, %v1310_v50  ;;  %v1219_v46 = vsub.f32 0.0, %v1215_v17  ;;  %v2989_v50 = vld [vmem:[#allocation3 + $0x18] sm:$0xff] }
 0x1ed   : > { %v881_v7 = vpop.permute.xlu1 %880  ;;  %v980_v26 = vrot.slane %v3131_v27, 7  ;;  %v1316_v8 = vsub.f32 0.0, %v1312_v59 }
 0x1ee   : > { %1770 = vpow2.f32 %v966_v19  ;;  %v1318_v40 = vmul.f32 1.442695, %v1314_v63  ;;  %v1224_v22 = vmul.f32 1.442695, %v1219_v46  ;;  %v887_v38 = vsub.f32 %v2601_v52, %v881_v7 }
 0x1ef   : > { %v957_v10 = vpop.permute.xlu0 %956  ;;  %1772 = vpow2.f32 %v1062_v49  ;;  %v982_v62 = vsel %vm916_vm4, %v980_v26, %v3126_v56  ;;  %v983_v37 = vsel %vm916_vm4, %v979_v43, %v980_v26  ;;  %v890_v19 = vand.u32 2147483647, %v886_v36 }
 0x1f0   : > { %v961_v60 = vadd.f32 %v957_v10, %v949_v25  ;;  %v964_v25 = vsub.f32 0.0, %v960_v11  ;;  %1774 = vpow2.f32 %v968_v12  ;;  %v988_v12 = vsub.f32 %v3131_v27, %v983_v37 }
 0x1f1   : > { %v1322_v17 = vmul.f32 1.442695, %v1316_v8  ;;  %v891_v54 = vand.u32 2147483647, %v887_v38  ;;  %v1240_v46 = vsel %vm916_vm4, %v1234_v53, %v1235_v42 }
 0x1f2   : > { %v965_v47 = vsub.f32 0.0, %v961_v60  ;;  %v1066_v60 = vmul.f32 1.442695, %v1060_v57  ;;  %v970_v31 = vmul.f32 1.442695, %v964_v25  ;;  %v1243_v42 = vsub.f32 %v2747_v41, %v1240_v46 }
 0x1f3   : > { %v1195_v61 = vpop.permute.xlu0 %1194 }
 0x1f4   : > { %v972_v1 = vmul.f32 1.442695, %v965_v47  ;;  %v1202_v58 = vadd.f32 %v1195_v61, %v3130_v2  ;;  %v885_v61 = vpop.permute.xlu1 %884  ;;  %v992_v2 = vand.u32 2147483647, %v988_v12 }
 0x1f5   : > { %v889_v51 = vsub.f32 %v2989_v50, %v885_v61 }
 0x1f6   : > { %1776 = vpow2.f32 %v972_v1 }
 0x1f7   : > { %v1199_v16 = vpop.permute.xlu0 %1198  ;;  %1778 = vpow2.f32 %v1064_v21  ;;  %v1324_v21 = vmul.f32 1.442695, %v1317_v24  ;;  %v893_v5 = vand.u32 2147483647, %v889_v51 }
 0x1f8   : > { %1780 = vpow2.f32 %v1068_v39  ;;  %v1204_v55 = vadd.f32 %v1199_v16, %v3132_v23  ;;  %v989_v16 = vsub.f32 %v2989_v50, %v982_v62  ;;  %v1771_v29 = vpop.eup %1770  ;;  %v1141_v35 = vpop.permute.xlu1 %1140  ;;  %v1238_v62 = vsel %vm916_vm4, %v1236_v30, %v3126_v56 }
 0x1f9   : > { %1782 = vpow2.f32 %v1066_v60  ;;  %v1773_v43 = vpop.eup %1772  ;;  %v974_v28 = vmul.f32 %v1771_v29, %v890_v19  ;;  %v1147_v26 = vsub.f32 %v2747_v41, %v1141_v35  ;;  %v1247_v19 = vand.u32 2147483647, %v1243_v42 }
 0x1fa   : > { %1784 = vpow2.f32 %v1318_v40  ;;  %v1775_v1 = vpop.eup %1774  ;;  %v993_v7 = vand.u32 2147483647, %v989_v16  ;;  %v1070_v40 = vmul.f32 %v1773_v43, %v990_v13  ;;  %v1248_v16 = vand.u32 2147483647, %v1244_v6 }
 0x1fb   : > { %v1201_v10 = vpop.permute.xlu0 %1200  ;;  %1786 = vpow2.f32 %v970_v31  ;;  %v975_v59 = vmul.f32 %v1775_v1, %v891_v54  ;;  %v1151_v8 = vand.u32 2147483647, %v1147_v26 }
 0x1fc   : > { %1788 = vpow2.f32 %v1224_v22  ;;  %v1205_v11 = vadd.f32 %v1201_v10, %v3133_v32  ;;  %v1074_v53 = vadd.f32 %v1070_v40, %v974_v28 }
 0x1fd   : > { %1790 = vpow2.f32 %v1320_v44 }
 0x1fe   : > { %v1082_v48 = vrot.slane %v1074_v53, 7 }
 0x1ff   : > { %v1207_v34 = vpop.permute.xlu0 %1206 }
 0x200   : > { %v1214_v3 = vadd.f32 %v1207_v34, %v1202_v58  ;;  %v1777_v63 = vpop.eup %1776  ;;  %v1242_v58 = vsub.f32 %v2785_v14, %v1241_v0 }
 0x201   : > { %v1779_v25 = vpop.eup %1778  ;;  %v977_v20 = vmul.f32 %v1777_v63, %v893_v5 }
 0x202   : > { %v1218_v47 = vsub.f32 0.0, %v1214_v3  ;;  %v1781_v60 = vpop.eup %1780  ;;  %v1071_v31 = vmul.f32 %v1779_v25, %v2972_v15  ;;  %v1246_v15 = vand.u32 2147483647, %v1242_v58 }
 0x203   : > { %v1211_v9 = vpop.permute.xlu0 %1210  ;;  %v1783_v36 = vpop.eup %1782  ;;  %v1073_v61 = vmul.f32 %v1781_v60, %v993_v7 }
 0x204   : > { %v1216_v45 = vadd.f32 %v1211_v9, %v1204_v55  ;;  %v1222_v49 = vmul.f32 1.442695, %v1218_v47  ;;  %v1785_v22 = vpop.eup %1784  ;;  %v1145_v55 = vpop.permute.xlu1 %1144  ;;  %v1072_v37 = vmul.f32 %v1783_v36, %v992_v2 }
 0x205   : > { %v1787_v47 = vpop.eup %1786  ;;  %v1077_v41 = vadd.f32 %v1073_v61, %v977_v20  ;;  %v1149_v30 = vsub.f32 %v2989_v50, %v1145_v55  ;;  %v1326_v12 = vmul.f32 %v1785_v22, %v1246_v15 }
 0x206   : > { %v1220_v52 = vsub.f32 0.0, %v1216_v45  ;;  %1792 = vpow2.f32 %v1222_v49  ;;  %v1789_v9 = vpop.eup %1788  ;;  %v1245_v45 = vsub.f32 %v2989_v50, %v1238_v62 }
 0x207   : > { %v1213_v57 = vpop.permute.xlu0 %1212  ;;  %1794 = vpow2.f32 %v1322_v17  ;;  %v1791_v56 = vpop.eup %1790  ;;  %v1153_v1 = vand.u32 2147483647, %v1149_v30 }
 0x208   : > { %v1217_v10 = vadd.f32 %v1213_v57, %v1205_v11  ;;  %v1226_v39 = vmul.f32 1.442695, %v1220_v52  ;;  %1796 = vpow2.f32 %v1324_v21  ;;  %v1231_v52 = vmul.f32 %v1789_v9, %v1151_v8 }
 0x209   : > { %v1249_v0 = vand.u32 2147483647, %v1245_v45  ;;  %v1327_v13 = vmul.f32 %v1791_v56, %v1247_v19 }
 0x20a   : > { %v1221_v4 = vsub.f32 0.0, %v1217_v10  ;;  %1798 = vpow2.f32 %v1226_v39 }
 0x20b   : > { %v883_v34 = vpop.permute.xlu0 %882  ;;  %v1331_v25 = vadd.f32 %v1327_v13, %v1231_v52 }
 0x20c   : > { %v1228_v3 = vmul.f32 1.442695, %v1221_v4  ;;  %v888_v44 = vsub.f32 %v3131_v27, %v883_v34  ;;  %v1075_v27 = vadd.f32 %v1071_v31, %v975_v59 }
 0x20d   : > { %v1338_v26 = vrot.slane %v1331_v25, 7 }
 0x20e   : > { %1800 = vpow2.f32 %v1228_v3  ;;  %v892_v23 = vand.u32 2147483647, %v888_v44  ;;  %v1083_v11 = vrot.slane %v1075_v27, 7 }
 0x20f   : > { %v1139_v38 = vpop.permute.xlu0 %1138 }
 0x210   : > { %v976_v24 = vmul.f32 %v1787_v47, %v892_v23  ;;  %v1146_v51 = vsub.f32 %v2785_v14, %v1139_v38  ;;  %v1793_v32 = vpop.eup %1792  ;;  %v1100_v14 = vrot.slane %v1077_v41, 7  ;;  %v1084_v33 = vsel %vm1081_vm6, %v1082_v48, %v1083_v11 }
 0x211   : > { %v1795_v57 = vpop.eup %1794 }
 0x212   : > { %v1076_v49 = vadd.f32 %v1072_v37, %v976_v24  ;;  %v1150_v29 = vand.u32 2147483647, %v1146_v51  ;;  %v1797_v6 = vpop.eup %1796 }
 0x213   : > { %v1143_v43 = vpop.permute.xlu0 %1142  ;;  %v1329_v4 = vmul.f32 %v1797_v6, %v1249_v0 }
 0x214   : > { %v1085_v17 = vrot.slane %v1076_v49, 7  ;;  %v1230_v54 = vmul.f32 %v1793_v32, %v1150_v29  ;;  %v1148_v50 = vsub.f32 %v2793_v18, %v1143_v43  ;;  %v1799_v63 = vpop.eup %1798  ;;  %v1328_v18 = vmul.f32 %v1795_v57, %v1248_v16 }
 0x216   : > { %v1330_v21 = vadd.f32 %v1326_v12, %v1230_v54  ;;  %v1152_v5 = vand.u32 2147483647, %v1148_v50  ;;  %v1101_v35 = vsel %vm1081_vm6, %v1085_v17, %v1100_v14  ;;  %v1086_v10 = vsel %vm1081_vm6, %v1083_v11, %v1085_v17 }
 0x217   : > { %v1104_v7 = vsel %vm1103_vm7, %v1101_v35, 0.0  ;;  %v1089_v39 = vadd.f32 %v1086_v10, %v1084_v33 }
 0x218   : > { %v1801_v28 = vpop.eup %1800  ;;  %v1232_v46 = vmul.f32 %v1799_v63, %v1152_v5  ;;  %1105 = vadd.xlane.f32.xlu1 %v1104_v7  ;;  %v1337_v58 = vrot.slane %v1330_v21, 7 }
 0x219   : > { %v1233_v2 = vmul.f32 %v1801_v28, %v1153_v1  ;;  %1090 = vadd.xlane.f32.xlu0 %v1089_v39 }
 0x21a   : > { %v1332_v60 = vadd.f32 %v1328_v18, %v1232_v46  ;;  %v1339_v20 = vsel %vm1081_vm6, %v1337_v58, %v1338_v26 }
 0x21b   : > { %v1333_v59 = vadd.f32 %v1329_v4, %v1233_v2 }
 0x21c   : > { %v1340_v34 = vrot.slane %v1332_v60, 7 }
 0x21d   : > { %v1355_v40 = vrot.slane %v1333_v59, 7 }
 0x21e   : > { %v1341_v3 = vsel %vm1081_vm6, %v1338_v26, %v1340_v34 }
 0x21f   : > { %v1356_v44 = vsel %vm1081_vm6, %v1340_v34, %v1355_v40  ;;  %v1344_v36 = vadd.f32 %v1341_v3, %v1339_v20 }
 0x220   : > { %v1358_v31 = vsel %vm1103_vm7, %v1356_v44, 0.0 }
 0x221   : > { %1359 = vadd.xlane.f32.xlu1 %v1358_v31  ;;  %1345 = vadd.xlane.f32.xlu0 %v1344_v36 }
 0x238   : > { %v559_v42 = vpop.xlane.xlu1 %558 }
 0x239   : > { %v560_v22 = vrot.slane %v559_v42, 4 }
 0x23b   : > { %v561_v61 = vadd.f32 %v560_v22, %v559_v42 }
 0x23c   : > { %v614_v53 = vpop.xlane.xlu1 %613 }
 0x23d   : > { %v615_v23 = vrot.slane %v614_v53, 4  ;;  %v562_v47 = vrot.slane %v561_v61, 2 }
 0x23f   : > { %v616_v8 = vadd.f32 %v615_v23, %v614_v53  ;;  %v563_v9 = vadd.f32 %v562_v47, %v561_v61 }
 0x240   : > { %v664_v62 = vpop.xlane.xlu1 %663 }
 0x241   : > { %v665_v15 = vrot.slane %v664_v62, 4  ;;  %v617_v51 = vrot.slane %v616_v8, 2  ;;  %v564_v56 = vrot.slane %v563_v9, 1 }
 0x243   : > { %v666_v30 = vadd.f32 %v665_v15, %v664_v62  ;;  %v618_v32 = vadd.f32 %v617_v51, %v616_v8  ;;  %v565_v50 = vadd.f32 %v564_v56, %v563_v9 }
 0x244   : > { %v702_v55 = vpop.xlane.xlu1 %701 }
 0x245   : > { %v703_v48 = vrot.slane %v702_v55, 4  ;;  %v667_v12 = vrot.slane %v666_v30, 2  ;;  %v619_v33 = vrot.slane %v618_v32, 1 }
 0x247   : > { %v704_v17 = vadd.f32 %v703_v48, %v702_v55  ;;  %v668_v35 = vadd.f32 %v667_v12, %v666_v30  ;;  %v620_v4 = vadd.f32 %v619_v33, %v618_v32 }
 0x248   : > { %v750_v37 = vpop.xlane.xlu1 %749 }
 0x249   : > { %v751_v54 = vrot.slane %v750_v37, 4  ;;  %v705_v10 = vrot.slane %v704_v17, 2  ;;  %v669_v59 = vrot.slane %v668_v35, 1 }
 0x24b   : > { %v752_v63 = vadd.f32 %v751_v54, %v750_v37  ;;  %v706_v20 = vadd.f32 %v705_v10, %v704_v17  ;;  %v670_v62 = vadd.f32 %v669_v59, %v668_v35 }
 0x24c   : > { %v788_v43 = vpop.xlane.xlu1 %787 }
 0x24d   : > { %v540_v27 = vpop.xlane.xlu0 %539  ;;  %v789_v7 = vrot.slane %v788_v43, 4  ;;  %v753_v26 = vrot.slane %v752_v63, 2  ;;  %v707_v55 = vrot.slane %v706_v20, 1 }
 0x24e   : > { %v541_v38 = vrot.slane %v540_v27, 4 }
 0x24f   : > { %v790_v34 = vadd.f32 %v789_v7, %v788_v43  ;;  %v754_v47 = vadd.f32 %v753_v26, %v752_v63  ;;  %v708_v51 = vadd.f32 %v707_v55, %v706_v20 }
 0x250   : > { %v542_v41 = vadd.f32 %v541_v38, %v540_v27  ;;  %v824_v28 = vpop.xlane.xlu1 %823 }
 0x251   : > { %v578_v24 = vpop.xlane.xlu0 %577  ;;  %v825_v40 = vrot.slane %v824_v28, 4  ;;  %v791_v61 = vrot.slane %v790_v34, 2 }
 0x252   : > { %v543_v45 = vrot.slane %v542_v41, 2  ;;  %v579_v19 = vrot.slane %v578_v24, 4 }
 0x253   : > { %v826_v23 = vadd.f32 %v825_v40, %v824_v28 }
 0x254   : > { %v580_v16 = vadd.f32 %v579_v19, %v578_v24  ;;  %v544_v49 = vadd.f32 %v543_v45, %v542_v41  ;;  %v755_v45 = vrot.slane %v754_v47, 1  ;;  %v792_v19 = vadd.f32 %v791_v61, %v790_v34 }
 0x255   : > { %v597_v29 = vpop.xlane.xlu0 %596  ;;  %v827_v24 = vrot.slane %v826_v23, 2 }
 0x256   : > { %v581_v11 = vrot.slane %v580_v16, 2  ;;  %v598_v52 = vrot.slane %v597_v29, 4  ;;  %v545_v14 = vrot.slane %v544_v49, 1 }
 0x257   : > { %v828_v12 = vadd.f32 %v827_v24, %v826_v23 }
 0x258   : > { %v599_v57 = vadd.f32 %v598_v52, %v597_v29  ;;  %v546_v0 = vadd.f32 %v545_v14, %v544_v49  ;;  %v582_v13 = vadd.f32 %v581_v11, %v580_v16  ;;  %v756_v11 = vadd.f32 %v755_v45, %v754_v47 }
 0x259   : > { %v645_v1 = vpop.xlane.xlu0 %644  ;;  %v793_v52 = vrot.slane %v792_v19, 1 }
 0x25a   : > { %v600_v6 = vrot.slane %v599_v57, 2  ;;  %v646_v21 = vrot.slane %v645_v1, 4  ;;  %1647 = vpush %v546_v0  ;;  %v583_v5 = vrot.slane %v582_v13, 1  ;;  %v829_v0 = vrot.slane %v828_v12, 1 }
 0x25b   : > { %1649 = vpush %v565_v50 }
 0x25c   : > { %v647_v39 = vadd.f32 %v646_v21, %v645_v1  ;;  %v584_v25 = vadd.f32 %v583_v5, %v582_v13  ;;  %v601_v18 = vadd.f32 %v600_v6, %v599_v57  ;;  %v794_v57 = vadd.f32 %v793_v52, %v792_v19 }
 0x25d   : > { %v683_v46 = vpop.xlane.xlu0 %682  ;;  %v830_v6 = vadd.f32 %v829_v0, %v828_v12 }
 0x25e   : > { %v648_v2 = vrot.slane %v647_v39, 2  ;;  %v684_v58 = vrot.slane %v683_v46, 4  ;;  %1651 = vpush %v584_v25  ;;  %v602_v60 = vrot.slane %v601_v18, 1 }
 0x260   : > { %v685_v3 = vadd.f32 %v684_v58, %v683_v46  ;;  %v603_v44 = vadd.f32 %v602_v60, %v601_v18  ;;  %v649_v36 = vadd.f32 %v648_v2, %v647_v39 }
 0x261   : > { %v719_v31 = vpop.xlane.xlu0 %718 }
 0x262   : > { %v686_v42 = vrot.slane %v685_v3, 2  ;;  %v720_v53 = vrot.slane %v719_v31, 4  ;;  %1653 = vpush %v603_v44  ;;  %v650_v22 = vrot.slane %v649_v36, 1 }
 0x263   : > { %1655 = vpush %v620_v4 }
 0x264   : > { %v721_v27 = vadd.f32 %v720_v53, %v719_v31  ;;  %v651_v8 = vadd.f32 %v650_v22, %v649_v36  ;;  %v687_v38 = vadd.f32 %v686_v42, %v685_v3 }
 0x265   : > { %v769_v15 = vpop.xlane.xlu0 %768 }
 0x266   : > { %v722_v9 = vrot.slane %v721_v27, 2  ;;  %v770_v41 = vrot.slane %v769_v15, 4  ;;  %1657 = vpush %v651_v8  ;;  %v688_v37 = vrot.slane %v687_v38, 1 }
 0x267   : > { %1659 = vpush %v670_v62 }
 0x268   : > { %v771_v30 = vadd.f32 %v770_v41, %v769_v15  ;;  %v689_v48 = vadd.f32 %v688_v37, %v687_v38  ;;  %v723_v56 = vadd.f32 %v722_v9, %v721_v27 }
 0x269   : > { %v807_v16 = vpop.xlane.xlu0 %806 }
 0x26a   : > { %v772_v49 = vrot.slane %v771_v30, 2  ;;  %v808_v29 = vrot.slane %v807_v16, 4  ;;  %1661 = vpush %v689_v48  ;;  %v724_v32 = vrot.slane %v723_v56, 1 }
 0x26b   : > { %1663 = vpush %v708_v51 }
 0x26c   : > { %v809_v43 = vadd.f32 %v808_v29, %v807_v16  ;;  %v725_v14 = vadd.f32 %v724_v32, %v723_v56  ;;  %v773_v17 = vadd.f32 %v772_v49, %v771_v30 }
 0x26e   : > { %v810_v54 = vrot.slane %v809_v43, 2  ;;  %1665 = vpush %v725_v14  ;;  %v774_v50 = vrot.slane %v773_v17, 1 }
 0x26f   : > { %1667 = vpush %v756_v11 }
 0x270   : > { %v775_v13 = vadd.f32 %v774_v50, %v773_v17  ;;  %v811_v1 = vadd.f32 %v810_v54, %v809_v43 }
 0x272   : > { %1669 = vpush %v775_v13  ;;  %v812_v33 = vrot.slane %v811_v1, 1 }
 0x273   : > { %1671 = vpush %v794_v57 }
 0x274   : > { %v813_v21 = vadd.f32 %v812_v33, %v811_v1 }
 0x276   : > { %1673 = vpush %v813_v21 }
 0x277   : > { %1675 = vpush %v830_v6 }
 0x28b   : > { %s1648_s15 = spop %1647 }
 0x28c   : > { %s1650_s24 = spop %1649 }
 0x28f   : > { %s1652_s10 = spop %1651 }
 0x293   : > { %s1654_s8 = spop %1653 }
 0x294   : > { %s3031_s11 = spop %1655 }
 0x297   : > { %s1658_s17 = spop %1657 }
 0x298   : > { %s1660_s20 = spop %1659  ;;  %s653_s6 = sadd.f32 %s1658_s17, %s1648_s15 }
 0x299   : > { %s672_s9 = sadd.f32 %s1660_s20, %s1650_s24 }
 0x29b   : > { %s1662_s28 = spop %1661 }
 0x29c   : > { %s1664_s21 = spop %1663  ;;  %s691_s25 = sadd.f32 %s1662_s28, %s1652_s10 }
 0x29d   : > { %s710_s30 = sadd.f32 %s1664_s21, %s1654_s8 }
 0x29f   : > { %s1666_s19 = spop %1665 }
 0x2a0   : > { %s1668_s12 = spop %1667  ;;  %s727_s18 = sadd.f32 %s1666_s19, %s3031_s11 }
 0x2a1   : > { %s758_s1 = sadd.f32 %s1668_s12, %s653_s6  ;;  %s1617_s11 = sshll.u32 %s3146_s13, 3 }
 0x2a2   : > { %s3135_s19 = sld [smem:[#allocation36_spill]] }
 0x2a3   : > { %s1670_s16 = spop %1669  ;;  %v1370_v23 = vstv %s758_s1 }
 0x2a4   : > { %s777_s29 = sadd.f32 %s1670_s16, %s672_s9  ;;  %s1672_s27 = spop %1671 }
 0x2a5   : > { %v1106_v5 = vpop.xlane.xlu1 %1105  ;;  %s796_s26 = sadd.f32 %s1672_s27, %s691_s25 }
 0x2a6   : > { %v1107_v35 = vrot.slane %v1106_v5, 4  ;;  %v1091_v10 = vpop.xlane.xlu0 %1090  ;;  %v1371_v55 = vstv %s777_s29 }
 0x2a7   : > { %v1092_v63 = vrot.slane %v1091_v10, 4  ;;  %s1674_s23 = spop %1673  ;;  %v1377_v47 = vsel %vm1081_vm6, %v1370_v23, %v1371_v55  ;;  %v1372_v27 = vstv %s796_s26 }
 0x2a8   : > { %v1108_v7 = vadd.f32 %v1107_v35, %v1106_v5  ;;  %s1676_s14 = spop %1675  ;;  %s815_s7 = sadd.f32 %s1674_s23, %s710_s30  ;;  %v1378_v8 = vsel %vm1103_vm7, %v1377_v47, %v1372_v27 }
 0x2a9   : > { %v1093_v39 = vadd.f32 %v1092_v63, %v1091_v10  ;;  %s832_s24 = sadd.f32 %s1676_s14, %s727_s18  ;;  %s513_s6 = scalar_lea.vmem %s3135_s19, %s1617_s11 }
 0x2aa   : > { %v1109_v28 = vrot.slane %v1108_v7, 2  ;;  %v1373_v38 = vstv %s815_s7 }
 0x2ab   : > { %v1094_v25 = vrot.slane %v1093_v39, 2  ;;  %v1380_v15 = vsel %vm1379_vm8, %v1378_v8, %v1373_v38  ;;  %v1374_v9 = vstv %s832_s24 }
 0x2ac   : > { %v1110_v18 = vadd.f32 %v1109_v28, %v1108_v7  ;;  %v1382_v37 = vsel %vm1381_vm9, %v1380_v15, %v1374_v9 }
 0x2ad   : > { %v1095_v46 = vadd.f32 %v1094_v25, %v1093_v39 }
 0x2ae   : > { %v1360_v4 = vpop.xlane.xlu1 %1359  ;;  %v1346_v2 = vpop.xlane.xlu0 %1345  ;;  %v1111_v58 = vrot.slane %v1110_v18, 1 }
 0x2af   : > { %v1361_v60 = vrot.slane %v1360_v4, 4  ;;  %v1347_v59 = vrot.slane %v1346_v2, 4  ;;  %v1096_v26 = vrot.slane %v1095_v46, 1 }
 0x2b0   : > { %v1112_v34 = vadd.f32 %v1111_v58, %v1110_v18 }
 0x2b1   : > { %v1362_v40 = vadd.f32 %v1361_v60, %v1360_v4  ;;  %v1348_v20 = vadd.f32 %v1347_v59, %v1346_v2  ;;  %v1097_v3 = vadd.f32 %v1096_v26, %v1095_v46 }
 0x2b3   : > { %v1363_v44 = vrot.slane %v1362_v40, 2  ;;  %v1349_v36 = vrot.slane %v1348_v20, 2  ;;  %1677 = vpush %v1097_v3 }
 0x2b4   : > { %1679 = vpush %v1112_v34 }
 0x2b5   : > { %v1364_v31 = vadd.f32 %v1363_v44, %v1362_v40  ;;  %v1350_v42 = vadd.f32 %v1349_v36, %v1348_v20 }
 0x2b7   : > { %v1351_v53 = vrot.slane %v1350_v42, 1  ;;  %v1365_v22 = vrot.slane %v1364_v31, 1 }
 0x2b9   : > { %v1352_v62 = vadd.f32 %v1351_v53, %v1350_v42  ;;  %v1366_v61 = vadd.f32 %v1365_v22, %v1364_v31 }
 0x2bb   : > { %1681 = vpush %v1352_v62 }
 0x2bc   : > { %1683 = vpush %v1366_v61 }
 0x2e4   : > { %s1678_s3 = spop %1677 }
 0x2e5   : > { %s1680_s15 = spop %1679 }
 0x2e6   : > { %s1115_s10 = sadd.f32 %s1680_s15, %s1678_s3 }
 0x2e8   : > { %v1375_v41 = vstv %s1115_s10 }
 0x2e9   : > { %v1384_v24 = vsel %vm1383_vm10, %v1382_v37, %v1375_v41 }
 0x2ec   : > { %s1682_s8 = spop %1681 }
 0x2ed   : > { %s1684_s17 = spop %1683 }
 0x2ee   : > { %s1369_s20 = sadd.f32 %s1684_s17, %s1682_s8 }
 0x2f0   : > { %v1376_v51 = vstv %s1369_s20 }
 0x2f1   : > { %v1386_v45 = vsel %vm1385_vm11, %v1384_v24, %v1376_v51 }
 0x2f2   : > { %v1388_v19 = vsel %vm1387_vm12, %v1386_v45, 0.0 }
 0x2f3   : > { %1389 = vst [vmem:[%s513_s6] sm:$0xff] %v1388_v19 }
 0x2f4 PF: > { %s3136_s12 = sld [smem:[#allocation21_spill]]  ;;  %s3137_s13 = sld [smem:[#allocation18_spill]] }
 0x2f5   : > { %s3138_s23 = sld [smem:[#allocation23_spill]]  ;;  %s3139_s24 = sld [smem:[#allocation20_spill]] }
 0x2f6   : > { %s3140_s25 = sld [smem:[#allocation22_spill]]  ;;  %s3141_s21 = smov %s2029_s22 }
 0x2fa   : > { %s28_s26 = sadd.s32 1, %s3136_s12   ;;  %s3142_s22 = smov %s3137_s13 }
 0x2fb   : > { %p25_p2 = scmp.ge.s32.totalorder %s28_s26, 4  }
 0x2fd   :  { %27 = sbr.rel (!%p25_p2) target bundleno = 14 (0xe), region = 153 }
 0x304   :  { %1415 = vsyncpa [#allocation5], 1 }
 0x305   :  { %1417 = vsyncpa [#allocation5 + $0x1], 1 }
 0x306   :  { %1418 = vsyncpa [#allocation7], 1 }
 0x307   :  { %1420 = vsyncpa [#allocation7 + $0x1], 1 }
 0x308   :  { %1421 = vsyncpa [#allocation10], 1 }
 0x309   :  { %1423 = vsyncpa [#allocation10 + $0x1], 1 }
 0x30a   :  { %1424 = vsyncpa [#allocation13], 1 }
 0x30b   :  { %1426 = vsyncpa [#allocation13 + $0x1], 1 }

</bundles_post_ra>
